<compile_context>
chip_gen: v5e
topology: v5e:2x2
jax: 0.10.0
libtpu: 0.0.40
codegen_flags: <defaults>
</compile_context>

<pallas_src>
import functools

import jax
import jax.numpy as jnp
from jax.experimental import pallas as pl
from jax.experimental.pallas import tpu as pltpu


def _disentangle_kernel(W, x_ref, w1_ref, b1_ref, w2_ref, b2_ref, o_ref):
    """Fused conv1 -> conv2 in a lane-dense (C, H*W) layout.

    x_ref : (nb, Cin, P)    VMEM   P = H*W, dense on the lane axis
    w1_ref: (Cmid, 3*Cin)   VMEM   w1_ref[co, kh*Cin+ci] = w1[kh, ci, co]
    b1_ref: (Cmid, 1)       VMEM
    w2_ref: (Cout, 3*Cmid)  VMEM
    b2_ref: (Cout, 1)       VMEM
    o_ref : (nb, Cout, P)   VMEM
    """
    nb, Cin, P = x_ref.shape
    Cmid = w1_ref.shape[0]
    Cout = o_ref.shape[1]

    # Lane-index masks: shifting the flattened p = h*W + w axis by +-W lanes
    # is exactly a +-1 shift in H; only the wrapped first/last image row must
    # be zeroed.
    lane = jax.lax.broadcasted_iota(jnp.int32, (1, P), 1)
    keep_m1 = lane >= W            # row h-1 exists except at h == 0
    keep_p1 = lane < (P - W)       # row h+1 exists except at h == H-1

    def taps(x):
        # x: (Ci, P) f32 -> (x[h-1], x[h], x[h+1]) with zero padding in H.
        # roll(x, s)[p] = x[(p - s) mod P]; masks kill the wrapped region.
        zero = jnp.zeros_like(x)
        x_m1 = jnp.where(keep_m1, pltpu.roll(x, shift=W, axis=1), zero)
        x_p1 = jnp.where(keep_p1, pltpu.roll(x, shift=P - W, axis=1), zero)
        return (x_m1, x, x_p1)

    def conv(x, w_ref, b_ref, Ci, Co):
        # 3-tap H-conv + channel mix, vectorized over output channels:
        # one (Co,1) x (1,P) broadcast-FMA per (kh, ci) tap on a sublane-packed
        # (Co, P) f32 accumulator initialized with the bias.
        # TODO(synk): for out_ch >= 32, stack the taps into (3*Ci, P) and use
        # an MXU jnp.dot against the (Co, 3*Ci) weight tile instead.
        xs = taps(x)
        acc = jnp.broadcast_to(b_ref[...].astype(jnp.float32), (Co, P))
        for kh in range(3):
            for ci in range(Ci):
                k = kh * Ci + ci
                w_col = w_ref[:, k:k + 1]              # (Co, 1) VMEM column
                acc = acc + w_col * xs[kh][ci:ci + 1, :]   # -> (Co, P)
        return acc

    for b in range(nb):  # nb is small & static; batch scaling goes via the grid
        h = conv(x_ref[b].astype(jnp.float32), w1_ref, b1_ref, Cin, Cmid)  # (Cmid, P)
        y = conv(h, w2_ref, b2_ref, Cmid, Cout)                            # (Cout, P)
        o_ref[b] = y.astype(o_ref.dtype)


def _pick_block_batches(N, Cin, Cout, P, itemsize):
    """Batches per grid block.

    Small problems collapse to one grid step (per-step overhead dominates at
    N=2/C=4 on single-TC v5e/v6e; on v7x the 2-TC split does not pay for
    itself at this size either). For large N, keep each block at a few
    hundred KiB so double-buffering overlaps DMA with compute, while capping
    the static unroll of the in-kernel batch loop.
    """
    per_batch = (Cin + Cout) * P * itemsize
    want = max(1, (256 * 1024) // max(per_batch, 1))
    want = min(want, 8)
    if want >= N:
        return N
    for nb in range(min(want, N), 0, -1):
        if N % nb == 0:
            return nb
    return 1


@jax.jit
def disentanglement_forward(x_nchw, w1, b1, w2, b2):
    """x_nchw: (N, C, H, W). w1: (3, C, C), b1: (C,), w2: (3, C, 2C), b2: (2C,).

    Returns (N, 2C, H, W). Works directly on NCHW: H*W is flattened onto the
    lane axis (free reshape), so there are no HBM-round-trip transposes.
    """
    N, Cin, H, W = x_nchw.shape
    P = H * W
    Cmid = w1.shape[-1]
    Cout = w2.shape[-1]

    x3 = x_nchw.reshape(N, Cin, P)          # free row-major reshape

    # Pre-transpose weights to (Co, 3*Ci) "one column per tap" VMEM tiles and
    # biases to (Co, 1): the kernel does lane-broadcast FMAs, no SMEM scalars.
    w1t = jnp.transpose(w1.reshape(3 * Cin, Cmid))     # (Cmid, 3*Cin)
    w2t = jnp.transpose(w2.reshape(3 * Cmid, Cout))    # (Cout, 3*Cmid)
    b1c = b1.reshape(Cmid, 1)
    b2c = b2.reshape(Cout, 1)

    nb = _pick_block_batches(N, Cin, Cout, P, jnp.dtype(x_nchw.dtype).itemsize)
    grid = (N // nb,)

    out3 = pl.pallas_call(
        functools.partial(_disentangle_kernel, W),
        out_shape=jax.ShapeDtypeStruct((N, Cout, P), x_nchw.dtype),
        grid=grid,
        in_specs=[
            pl.BlockSpec((nb, Cin, P), lambda n: (n, 0, 0)),
            pl.BlockSpec((Cmid, 3 * Cin), lambda n: (0, 0)),   # w1 tile
            pl.BlockSpec((Cmid, 1), lambda n: (0, 0)),         # b1 column
            pl.BlockSpec((Cout, 3 * Cmid), lambda n: (0, 0)),  # w2 tile
            pl.BlockSpec((Cout, 1), lambda n: (0, 0)),         # b2 column
        ],
        out_specs=pl.BlockSpec((nb, Cout, P), lambda n: (n, 0, 0)),
        compiler_params=pltpu.CompilerParams(
            dimension_semantics=("parallel",)),
    )(x3, w1t, b1c, w2t, b2c)

    return out3.reshape(N, Cout, H, W)


def _init_params(key, out_ch):
    """Deterministic params mirroring the PyTorch module.

    PyTorch weight shape: (Cout, Cin, 3, 1), xavier_normal_.
    PyTorch bias  shape: (Cout,), default uniform(-1/sqrt(fan_in), +).
    Stored here as weights (3, Cin, Cout) and biases (Cout,).
    """
    k1, k2, k3, k4 = jax.random.split(key, 4)

    def xavier_conv(k, cin, cout):
        fan_in = cin * 3 * 1
        fan_out = cout * 3 * 1
        std = (2.0 / (fan_in + fan_out)) ** 0.5
        w_pt = std * jax.random.normal(k, (cout, cin, 3, 1), jnp.float32)
        return jnp.transpose(w_pt[..., 0], (2, 1, 0))  # (3, Cin, Cout)

    def default_bias(k, cin, cout):
        bound = 1.0 / (cin * 3) ** 0.5
        return jax.random.uniform(k, (cout,), jnp.float32, -bound, bound)

    w1 = xavier_conv(k1, out_ch, out_ch)
    b1 = default_bias(k2, out_ch, out_ch)
    w2 = xavier_conv(k3, out_ch, 2 * out_ch)
    b2 = default_bias(k4, out_ch, 2 * out_ch)
    return w1, b1, w2, b2


def _reference_forward(x_nchw, w1, b1, w2, b2):
    """Plain-JAX reference (padded einsum on NCHW) for validation."""
    def conv(x, w, b):  # x: (N, C, H, W); w: (3, Ci, Co); b: (Co,)
        H = x.shape[2]
        xp = jnp.pad(x, ((0, 0), (0, 0), (1, 1), (0, 0)))
        y = sum(
            jnp.einsum("nchw,cd->ndhw", xp[:, :, kh:kh + H, :], w[kh],
                       preferred_element_type=jnp.float32)
            for kh in range(3)
        )
        return y + b[None, :, None, None]

    return conv(conv(x_nchw, w1, b1), w2, b2)


if __name__ == "__main__":
    out_ch = 4
    N, H, W = 2, 16, 16

    key = jax.random.PRNGKey(0)
    kx, kp = jax.random.split(key)
    x = jax.random.normal(kx, (N, out_ch, H, W), jnp.float32)
    w1, b1, w2, b2 = _init_params(kp, out_ch)

    y = disentanglement_forward(x, w1, b1, w2, b2)
    y = jax.block_until_ready(y)

    assert y.shape == (N, 2 * out_ch, H, W), y.shape

    y_ref = _reference_forward(x, w1, b1, w2, b2)
    err = float(jnp.max(jnp.abs(y - y_ref)))
    assert jnp.allclose(y, y_ref, atol=1e-3, rtol=1e-3), err

    print("KERNEL_OK")
</pallas_src>

<mosaic_0001>
module attributes {stable_mosaic.version = 11 : i64} {
  func.func @_disentangle_kernel(%arg0: i32, %arg1: memref<2x4x256xf32, #tpu.memory_space<vmem>>, %arg2: memref<4x12xf32, #tpu.memory_space<vmem>>, %arg3: memref<4x1xf32, #tpu.memory_space<vmem>>, %arg4: memref<8x12xf32, #tpu.memory_space<vmem>>, %arg5: memref<8x1xf32, #tpu.memory_space<vmem>>, %arg6: memref<2x8x256xf32, #tpu.memory_space<vmem>>) attributes {dimension_semantics = [#tpu.dimension_semantics<parallel>], iteration_bounds = array<i64: 1>, scalar_prefetch = 0 : i64, scratch_operands = 0 : i64, tpu.core_type = #tpu.core_type<tc>, window_params = [{transform_indices = @transform_0, window_bounds = array<i64: 2, 4, 256>}, {pipeline_mode = #tpu.pipeline_mode<synchronous>, transform_indices = @transform_1, window_bounds = array<i64: 4, 12>}, {pipeline_mode = #tpu.pipeline_mode<synchronous>, transform_indices = @transform_2, window_bounds = array<i64: 4, 1>}, {pipeline_mode = #tpu.pipeline_mode<synchronous>, transform_indices = @transform_3, window_bounds = array<i64: 8, 12>}, {pipeline_mode = #tpu.pipeline_mode<synchronous>, transform_indices = @transform_4, window_bounds = array<i64: 8, 1>}, {transform_indices = @transform_5, window_bounds = array<i64: 2, 8, 256>}]} {
    %0 = tpu.iota {dimensions = array<i32: 1>} : vector<1x256xi32>
    %c16_i32 = arith.constant 16 : i32
    %1 = vector.broadcast %c16_i32 : i32 to vector<1x256xi32>
    %2 = arith.cmpi sge, %0, %1 : vector<1x256xi32>
    %c240_i32 = arith.constant 240 : i32
    %3 = vector.broadcast %c240_i32 : i32 to vector<1x256xi32>
    %4 = arith.cmpi slt, %0, %3 : vector<1x256xi32>
    %c0 = arith.constant 0 : index
    %c0_0 = arith.constant 0 : index
    %c0_1 = arith.constant 0 : index
    %5 = vector.load %arg1[%c0, %c0_0, %c0_1] : memref<2x4x256xf32, #tpu.memory_space<vmem>>, vector<1x4x256xf32>
    %6 = vector.shape_cast %5 : vector<1x4x256xf32> to vector<4x256xf32>
    %cst = arith.constant 0.000000e+00 : f32
    %7 = vector.broadcast %cst : f32 to vector<4x256xf32>
    %c16_i32_2 = arith.constant 16 : i32
    %8 = tpu.dynamic_rotate %6 by %c16_i32_2 dim 1 : vector<4x256xf32>, i32 -> vector<4x256xf32>
    %9 = vector.shape_cast %2 : vector<1x256xi1> to vector<1x256xi1>
    %10 = vector.broadcast %9 : vector<1x256xi1> to vector<4x256xi1>
    %11 = arith.select %10, %8, %7 : vector<4x256xi1>, vector<4x256xf32>
    %c240_i32_3 = arith.constant 240 : i32
    %12 = tpu.dynamic_rotate %6 by %c240_i32_3 dim 1 : vector<4x256xf32>, i32 -> vector<4x256xf32>
    %13 = vector.shape_cast %4 : vector<1x256xi1> to vector<1x256xi1>
    %14 = vector.broadcast %13 : vector<1x256xi1> to vector<4x256xi1>
    %15 = arith.select %14, %12, %7 : vector<4x256xi1>, vector<4x256xf32>
    %c0_4 = arith.constant 0 : index
    %c0_5 = arith.constant 0 : index
    %16 = vector.load %arg3[%c0_4, %c0_5] : memref<4x1xf32, #tpu.memory_space<vmem>>, vector<4x1xf32>
    %17 = vector.shape_cast %16 : vector<4x1xf32> to vector<4x1xf32>
    %18 = vector.broadcast %17 : vector<4x1xf32> to vector<4x256xf32>
    %c0_6 = arith.constant 0 : index
    %c0_7 = arith.constant 0 : index
    %19 = vector.load %arg2[%c0_6, %c0_7] : memref<4x12xf32, #tpu.memory_space<vmem>>, vector<4x1xf32>
    %20 = vector.extract_strided_slice %11 {offsets = [0, 0], sizes = [1, 256], strides = [1, 1]} : vector<4x256xf32> to vector<1x256xf32>
    %21 = vector.broadcast %19 : vector<4x1xf32> to vector<4x256xf32>
    %22 = vector.broadcast %20 : vector<1x256xf32> to vector<4x256xf32>
    %23 = arith.mulf %21, %22 : vector<4x256xf32>
    %24 = arith.addf %18, %23 : vector<4x256xf32>
    %c0_8 = arith.constant 0 : index
    %c1 = arith.constant 1 : index
    %25 = vector.load %arg2[%c0_8, %c1] : memref<4x12xf32, #tpu.memory_space<vmem>>, vector<4x1xf32>
    %26 = vector.extract_strided_slice %11 {offsets = [1, 0], sizes = [1, 256], strides = [1, 1]} : vector<4x256xf32> to vector<1x256xf32>
    %27 = vector.broadcast %25 : vector<4x1xf32> to vector<4x256xf32>
    %28 = vector.broadcast %26 : vector<1x256xf32> to vector<4x256xf32>
    %29 = arith.mulf %27, %28 : vector<4x256xf32>
    %30 = arith.addf %24, %29 : vector<4x256xf32>
    %c0_9 = arith.constant 0 : index
    %c2 = arith.constant 2 : index
    %31 = vector.load %arg2[%c0_9, %c2] : memref<4x12xf32, #tpu.memory_space<vmem>>, vector<4x1xf32>
    %32 = vector.extract_strided_slice %11 {offsets = [2, 0], sizes = [1, 256], strides = [1, 1]} : vector<4x256xf32> to vector<1x256xf32>
    %33 = vector.broadcast %31 : vector<4x1xf32> to vector<4x256xf32>
    %34 = vector.broadcast %32 : vector<1x256xf32> to vector<4x256xf32>
    %35 = arith.mulf %33, %34 : vector<4x256xf32>
    %36 = arith.addf %30, %35 : vector<4x256xf32>
    %c0_10 = arith.constant 0 : index
    %c3 = arith.constant 3 : index
    %37 = vector.load %arg2[%c0_10, %c3] : memref<4x12xf32, #tpu.memory_space<vmem>>, vector<4x1xf32>
    %38 = vector.extract_strided_slice %11 {offsets = [3, 0], sizes = [1, 256], strides = [1, 1]} : vector<4x256xf32> to vector<1x256xf32>
    %39 = vector.broadcast %37 : vector<4x1xf32> to vector<4x256xf32>
    %40 = vector.broadcast %38 : vector<1x256xf32> to vector<4x256xf32>
    %41 = arith.mulf %39, %40 : vector<4x256xf32>
    %42 = arith.addf %36, %41 : vector<4x256xf32>
    %c0_11 = arith.constant 0 : index
    %c4 = arith.constant 4 : index
    %43 = vector.load %arg2[%c0_11, %c4] : memref<4x12xf32, #tpu.memory_space<vmem>>, vector<4x1xf32>
    %44 = vector.extract_strided_slice %6 {offsets = [0, 0], sizes = [1, 256], strides = [1, 1]} : vector<4x256xf32> to vector<1x256xf32>
    %45 = vector.broadcast %43 : vector<4x1xf32> to vector<4x256xf32>
    %46 = vector.broadcast %44 : vector<1x256xf32> to vector<4x256xf32>
    %47 = arith.mulf %45, %46 : vector<4x256xf32>
    %48 = arith.addf %42, %47 : vector<4x256xf32>
    %c0_12 = arith.constant 0 : index
    %c5 = arith.constant 5 : index
    %49 = vector.load %arg2[%c0_12, %c5] : memref<4x12xf32, #tpu.memory_space<vmem>>, vector<4x1xf32>
    %50 = vector.extract_strided_slice %6 {offsets = [1, 0], sizes = [1, 256], strides = [1, 1]} : vector<4x256xf32> to vector<1x256xf32>
    %51 = vector.broadcast %49 : vector<4x1xf32> to vector<4x256xf32>
    %52 = vector.broadcast %50 : vector<1x256xf32> to vector<4x256xf32>
    %53 = arith.mulf %51, %52 : vector<4x256xf32>
    %54 = arith.addf %48, %53 : vector<4x256xf32>
    %c0_13 = arith.constant 0 : index
    %c6 = arith.constant 6 : index
    %55 = vector.load %arg2[%c0_13, %c6] : memref<4x12xf32, #tpu.memory_space<vmem>>, vector<4x1xf32>
    %56 = vector.extract_strided_slice %6 {offsets = [2, 0], sizes = [1, 256], strides = [1, 1]} : vector<4x256xf32> to vector<1x256xf32>
    %57 = vector.broadcast %55 : vector<4x1xf32> to vector<4x256xf32>
    %58 = vector.broadcast %56 : vector<1x256xf32> to vector<4x256xf32>
    %59 = arith.mulf %57, %58 : vector<4x256xf32>
    %60 = arith.addf %54, %59 : vector<4x256xf32>
    %c0_14 = arith.constant 0 : index
    %c7 = arith.constant 7 : index
    %61 = vector.load %arg2[%c0_14, %c7] : memref<4x12xf32, #tpu.memory_space<vmem>>, vector<4x1xf32>
    %62 = vector.extract_strided_slice %6 {offsets = [3, 0], sizes = [1, 256], strides = [1, 1]} : vector<4x256xf32> to vector<1x256xf32>
    %63 = vector.broadcast %61 : vector<4x1xf32> to vector<4x256xf32>
    %64 = vector.broadcast %62 : vector<1x256xf32> to vector<4x256xf32>
    %65 = arith.mulf %63, %64 : vector<4x256xf32>
    %66 = arith.addf %60, %65 : vector<4x256xf32>
    %c0_15 = arith.constant 0 : index
    %c8 = arith.constant 8 : index
    %67 = vector.load %arg2[%c0_15, %c8] : memref<4x12xf32, #tpu.memory_space<vmem>>, vector<4x1xf32>
    %68 = vector.extract_strided_slice %15 {offsets = [0, 0], sizes = [1, 256], strides = [1, 1]} : vector<4x256xf32> to vector<1x256xf32>
    %69 = vector.broadcast %67 : vector<4x1xf32> to vector<4x256xf32>
    %70 = vector.broadcast %68 : vector<1x256xf32> to vector<4x256xf32>
    %71 = arith.mulf %69, %70 : vector<4x256xf32>
    %72 = arith.addf %66, %71 : vector<4x256xf32>
    %c0_16 = arith.constant 0 : index
    %c9 = arith.constant 9 : index
    %73 = vector.load %arg2[%c0_16, %c9] : memref<4x12xf32, #tpu.memory_space<vmem>>, vector<4x1xf32>
    %74 = vector.extract_strided_slice %15 {offsets = [1, 0], sizes = [1, 256], strides = [1, 1]} : vector<4x256xf32> to vector<1x256xf32>
    %75 = vector.broadcast %73 : vector<4x1xf32> to vector<4x256xf32>
    %76 = vector.broadcast %74 : vector<1x256xf32> to vector<4x256xf32>
    %77 = arith.mulf %75, %76 : vector<4x256xf32>
    %78 = arith.addf %72, %77 : vector<4x256xf32>
    %c0_17 = arith.constant 0 : index
    %c10 = arith.constant 10 : index
    %79 = vector.load %arg2[%c0_17, %c10] : memref<4x12xf32, #tpu.memory_space<vmem>>, vector<4x1xf32>
    %80 = vector.extract_strided_slice %15 {offsets = [2, 0], sizes = [1, 256], strides = [1, 1]} : vector<4x256xf32> to vector<1x256xf32>
    %81 = vector.broadcast %79 : vector<4x1xf32> to vector<4x256xf32>
    %82 = vector.broadcast %80 : vector<1x256xf32> to vector<4x256xf32>
    %83 = arith.mulf %81, %82 : vector<4x256xf32>
    %84 = arith.addf %78, %83 : vector<4x256xf32>
    %c0_18 = arith.constant 0 : index
    %c11 = arith.constant 11 : index
    %85 = vector.load %arg2[%c0_18, %c11] : memref<4x12xf32, #tpu.memory_space<vmem>>, vector<4x1xf32>
    %86 = vector.extract_strided_slice %15 {offsets = [3, 0], sizes = [1, 256], strides = [1, 1]} : vector<4x256xf32> to vector<1x256xf32>
    %87 = vector.broadcast %85 : vector<4x1xf32> to vector<4x256xf32>
    %88 = vector.broadcast %86 : vector<1x256xf32> to vector<4x256xf32>
    %89 = arith.mulf %87, %88 : vector<4x256xf32>
    %90 = arith.addf %84, %89 : vector<4x256xf32>
    %cst_19 = arith.constant 0.000000e+00 : f32
    %91 = vector.broadcast %cst_19 : f32 to vector<4x256xf32>
    %c16_i32_20 = arith.constant 16 : i32
    %92 = tpu.dynamic_rotate %90 by %c16_i32_20 dim 1 : vector<4x256xf32>, i32 -> vector<4x256xf32>
    %93 = vector.shape_cast %2 : vector<1x256xi1> to vector<1x256xi1>
    %94 = vector.broadcast %93 : vector<1x256xi1> to vector<4x256xi1>
    %95 = arith.select %94, %92, %91 : vector<4x256xi1>, vector<4x256xf32>
    %c240_i32_21 = arith.constant 240 : i32
    %96 = tpu.dynamic_rotate %90 by %c240_i32_21 dim 1 : vector<4x256xf32>, i32 -> vector<4x256xf32>
    %97 = vector.shape_cast %4 : vector<1x256xi1> to vector<1x256xi1>
    %98 = vector.broadcast %97 : vector<1x256xi1> to vector<4x256xi1>
    %99 = arith.select %98, %96, %91 : vector<4x256xi1>, vector<4x256xf32>
    %c0_22 = arith.constant 0 : index
    %c0_23 = arith.constant 0 : index
    %100 = vector.load %arg5[%c0_22, %c0_23] : memref<8x1xf32, #tpu.memory_space<vmem>>, vector<8x1xf32>
    %101 = vector.shape_cast %100 : vector<8x1xf32> to vector<8x1xf32>
    %102 = vector.broadcast %101 : vector<8x1xf32> to vector<8x256xf32>
    %c0_24 = arith.constant 0 : index
    %c0_25 = arith.constant 0 : index
    %103 = vector.load %arg4[%c0_24, %c0_25] : memref<8x12xf32, #tpu.memory_space<vmem>>, vector<8x1xf32>
    %104 = vector.extract_strided_slice %95 {offsets = [0, 0], sizes = [1, 256], strides = [1, 1]} : vector<4x256xf32> to vector<1x256xf32>
    %105 = vector.broadcast %103 : vector<8x1xf32> to vector<8x256xf32>
    %106 = vector.broadcast %104 : vector<1x256xf32> to vector<8x256xf32>
    %107 = arith.mulf %105, %106 : vector<8x256xf32>
    %108 = arith.addf %102, %107 : vector<8x256xf32>
    %c0_26 = arith.constant 0 : index
    %c1_27 = arith.constant 1 : index
    %109 = vector.load %arg4[%c0_26, %c1_27] : memref<8x12xf32, #tpu.memory_space<vmem>>, vector<8x1xf32>
    %110 = vector.extract_strided_slice %95 {offsets = [1, 0], sizes = [1, 256], strides = [1, 1]} : vector<4x256xf32> to vector<1x256xf32>
    %111 = vector.broadcast %109 : vector<8x1xf32> to vector<8x256xf32>
    %112 = vector.broadcast %110 : vector<1x256xf32> to vector<8x256xf32>
    %113 = arith.mulf %111, %112 : vector<8x256xf32>
    %114 = arith.addf %108, %113 : vector<8x256xf32>
    %c0_28 = arith.constant 0 : index
    %c2_29 = arith.constant 2 : index
    %115 = vector.load %arg4[%c0_28, %c2_29] : memref<8x12xf32, #tpu.memory_space<vmem>>, vector<8x1xf32>
    %116 = vector.extract_strided_slice %95 {offsets = [2, 0], sizes = [1, 256], strides = [1, 1]} : vector<4x256xf32> to vector<1x256xf32>
    %117 = vector.broadcast %115 : vector<8x1xf32> to vector<8x256xf32>
    %118 = vector.broadcast %116 : vector<1x256xf32> to vector<8x256xf32>
    %119 = arith.mulf %117, %118 : vector<8x256xf32>
    %120 = arith.addf %114, %119 : vector<8x256xf32>
    %c0_30 = arith.constant 0 : index
    %c3_31 = arith.constant 3 : index
    %121 = vector.load %arg4[%c0_30, %c3_31] : memref<8x12xf32, #tpu.memory_space<vmem>>, vector<8x1xf32>
    %122 = vector.extract_strided_slice %95 {offsets = [3, 0], sizes = [1, 256], strides = [1, 1]} : vector<4x256xf32> to vector<1x256xf32>
    %123 = vector.broadcast %121 : vector<8x1xf32> to vector<8x256xf32>
    %124 = vector.broadcast %122 : vector<1x256xf32> to vector<8x256xf32>
    %125 = arith.mulf %123, %124 : vector<8x256xf32>
    %126 = arith.addf %120, %125 : vector<8x256xf32>
    %c0_32 = arith.constant 0 : index
    %c4_33 = arith.constant 4 : index
    %127 = vector.load %arg4[%c0_32, %c4_33] : memref<8x12xf32, #tpu.memory_space<vmem>>, vector<8x1xf32>
    %128 = vector.extract_strided_slice %90 {offsets = [0, 0], sizes = [1, 256], strides = [1, 1]} : vector<4x256xf32> to vector<1x256xf32>
    %129 = vector.broadcast %127 : vector<8x1xf32> to vector<8x256xf32>
    %130 = vector.broadcast %128 : vector<1x256xf32> to vector<8x256xf32>
    %131 = arith.mulf %129, %130 : vector<8x256xf32>
    %132 = arith.addf %126, %131 : vector<8x256xf32>
    %c0_34 = arith.constant 0 : index
    %c5_35 = arith.constant 5 : index
    %133 = vector.load %arg4[%c0_34, %c5_35] : memref<8x12xf32, #tpu.memory_space<vmem>>, vector<8x1xf32>
    %134 = vector.extract_strided_slice %90 {offsets = [1, 0], sizes = [1, 256], strides = [1, 1]} : vector<4x256xf32> to vector<1x256xf32>
    %135 = vector.broadcast %133 : vector<8x1xf32> to vector<8x256xf32>
    %136 = vector.broadcast %134 : vector<1x256xf32> to vector<8x256xf32>
    %137 = arith.mulf %135, %136 : vector<8x256xf32>
    %138 = arith.addf %132, %137 : vector<8x256xf32>
    %c0_36 = arith.constant 0 : index
    %c6_37 = arith.constant 6 : index
    %139 = vector.load %arg4[%c0_36, %c6_37] : memref<8x12xf32, #tpu.memory_space<vmem>>, vector<8x1xf32>
    %140 = vector.extract_strided_slice %90 {offsets = [2, 0], sizes = [1, 256], strides = [1, 1]} : vector<4x256xf32> to vector<1x256xf32>
    %141 = vector.broadcast %139 : vector<8x1xf32> to vector<8x256xf32>
    %142 = vector.broadcast %140 : vector<1x256xf32> to vector<8x256xf32>
    %143 = arith.mulf %141, %142 : vector<8x256xf32>
    %144 = arith.addf %138, %143 : vector<8x256xf32>
    %c0_38 = arith.constant 0 : index
    %c7_39 = arith.constant 7 : index
    %145 = vector.load %arg4[%c0_38, %c7_39] : memref<8x12xf32, #tpu.memory_space<vmem>>, vector<8x1xf32>
    %146 = vector.extract_strided_slice %90 {offsets = [3, 0], sizes = [1, 256], strides = [1, 1]} : vector<4x256xf32> to vector<1x256xf32>
    %147 = vector.broadcast %145 : vector<8x1xf32> to vector<8x256xf32>
    %148 = vector.broadcast %146 : vector<1x256xf32> to vector<8x256xf32>
    %149 = arith.mulf %147, %148 : vector<8x256xf32>
    %150 = arith.addf %144, %149 : vector<8x256xf32>
    %c0_40 = arith.constant 0 : index
    %c8_41 = arith.constant 8 : index
    %151 = vector.load %arg4[%c0_40, %c8_41] : memref<8x12xf32, #tpu.memory_space<vmem>>, vector<8x1xf32>
    %152 = vector.extract_strided_slice %99 {offsets = [0, 0], sizes = [1, 256], strides = [1, 1]} : vector<4x256xf32> to vector<1x256xf32>
    %153 = vector.broadcast %151 : vector<8x1xf32> to vector<8x256xf32>
    %154 = vector.broadcast %152 : vector<1x256xf32> to vector<8x256xf32>
    %155 = arith.mulf %153, %154 : vector<8x256xf32>
    %156 = arith.addf %150, %155 : vector<8x256xf32>
    %c0_42 = arith.constant 0 : index
    %c9_43 = arith.constant 9 : index
    %157 = vector.load %arg4[%c0_42, %c9_43] : memref<8x12xf32, #tpu.memory_space<vmem>>, vector<8x1xf32>
    %158 = vector.extract_strided_slice %99 {offsets = [1, 0], sizes = [1, 256], strides = [1, 1]} : vector<4x256xf32> to vector<1x256xf32>
    %159 = vector.broadcast %157 : vector<8x1xf32> to vector<8x256xf32>
    %160 = vector.broadcast %158 : vector<1x256xf32> to vector<8x256xf32>
    %161 = arith.mulf %159, %160 : vector<8x256xf32>
    %162 = arith.addf %156, %161 : vector<8x256xf32>
    %c0_44 = arith.constant 0 : index
    %c10_45 = arith.constant 10 : index
    %163 = vector.load %arg4[%c0_44, %c10_45] : memref<8x12xf32, #tpu.memory_space<vmem>>, vector<8x1xf32>
    %164 = vector.extract_strided_slice %99 {offsets = [2, 0], sizes = [1, 256], strides = [1, 1]} : vector<4x256xf32> to vector<1x256xf32>
    %165 = vector.broadcast %163 : vector<8x1xf32> to vector<8x256xf32>
    %166 = vector.broadcast %164 : vector<1x256xf32> to vector<8x256xf32>
    %167 = arith.mulf %165, %166 : vector<8x256xf32>
    %168 = arith.addf %162, %167 : vector<8x256xf32>
    %c0_46 = arith.constant 0 : index
    %c11_47 = arith.constant 11 : index
    %169 = vector.load %arg4[%c0_46, %c11_47] : memref<8x12xf32, #tpu.memory_space<vmem>>, vector<8x1xf32>
    %170 = vector.extract_strided_slice %99 {offsets = [3, 0], sizes = [1, 256], strides = [1, 1]} : vector<4x256xf32> to vector<1x256xf32>
    %171 = vector.broadcast %169 : vector<8x1xf32> to vector<8x256xf32>
    %172 = vector.broadcast %170 : vector<1x256xf32> to vector<8x256xf32>
    %173 = arith.mulf %171, %172 : vector<8x256xf32>
    %174 = arith.addf %168, %173 : vector<8x256xf32>
    %c0_48 = arith.constant 0 : index
    %c0_49 = arith.constant 0 : index
    %c0_50 = arith.constant 0 : index
    %175 = vector.load %arg6[%c0_48, %c0_49, %c0_50] : memref<2x8x256xf32, #tpu.memory_space<vmem>>, vector<1x8x256xf32>
    %176 = vector.shape_cast %175 : vector<1x8x256xf32> to vector<8x256xf32>
    %177 = vector.shape_cast %174 : vector<8x256xf32> to vector<1x8x256xf32>
    tpu.vector_store %arg6[%c0_48, %c0_49, %c0_50], %177 {strides = array<i32>} : memref<2x8x256xf32, #tpu.memory_space<vmem>>, vector<1x8x256xf32>,
    %c1_51 = arith.constant 1 : index
    %c0_52 = arith.constant 0 : index
    %c0_53 = arith.constant 0 : index
    %178 = vector.load %arg1[%c1_51, %c0_52, %c0_53] : memref<2x4x256xf32, #tpu.memory_space<vmem>>, vector<1x4x256xf32>
    %179 = vector.shape_cast %178 : vector<1x4x256xf32> to vector<4x256xf32>
    %cst_54 = arith.constant 0.000000e+00 : f32
    %180 = vector.broadcast %cst_54 : f32 to vector<4x256xf32>
    %c16_i32_55 = arith.constant 16 : i32
    %181 = tpu.dynamic_rotate %179 by %c16_i32_55 dim 1 : vector<4x256xf32>, i32 -> vector<4x256xf32>
    %182 = vector.shape_cast %2 : vector<1x256xi1> to vector<1x256xi1>
    %183 = vector.broadcast %182 : vector<1x256xi1> to vector<4x256xi1>
    %184 = arith.select %183, %181, %180 : vector<4x256xi1>, vector<4x256xf32>
    %c240_i32_56 = arith.constant 240 : i32
    %185 = tpu.dynamic_rotate %179 by %c240_i32_56 dim 1 : vector<4x256xf32>, i32 -> vector<4x256xf32>
    %186 = vector.shape_cast %4 : vector<1x256xi1> to vector<1x256xi1>
    %187 = vector.broadcast %186 : vector<1x256xi1> to vector<4x256xi1>
    %188 = arith.select %187, %185, %180 : vector<4x256xi1>, vector<4x256xf32>
    %c0_57 = arith.constant 0 : index
    %c0_58 = arith.constant 0 : index
    %189 = vector.load %arg3[%c0_57, %c0_58] : memref<4x1xf32, #tpu.memory_space<vmem>>, vector<4x1xf32>
    %190 = vector.shape_cast %189 : vector<4x1xf32> to vector<4x1xf32>
    %191 = vector.broadcast %190 : vector<4x1xf32> to vector<4x256xf32>
    %c0_59 = arith.constant 0 : index
    %c0_60 = arith.constant 0 : index
    %192 = vector.load %arg2[%c0_59, %c0_60] : memref<4x12xf32, #tpu.memory_space<vmem>>, vector<4x1xf32>
    %193 = vector.extract_strided_slice %184 {offsets = [0, 0], sizes = [1, 256], strides = [1, 1]} : vector<4x256xf32> to vector<1x256xf32>
    %194 = vector.broadcast %192 : vector<4x1xf32> to vector<4x256xf32>
    %195 = vector.broadcast %193 : vector<1x256xf32> to vector<4x256xf32>
    %196 = arith.mulf %194, %195 : vector<4x256xf32>
    %197 = arith.addf %191, %196 : vector<4x256xf32>
    %c0_61 = arith.constant 0 : index
    %c1_62 = arith.constant 1 : index
    %198 = vector.load %arg2[%c0_61, %c1_62] : memref<4x12xf32, #tpu.memory_space<vmem>>, vector<4x1xf32>
    %199 = vector.extract_strided_slice %184 {offsets = [1, 0], sizes = [1, 256], strides = [1, 1]} : vector<4x256xf32> to vector<1x256xf32>
    %200 = vector.broadcast %198 : vector<4x1xf32> to vector<4x256xf32>
    %201 = vector.broadcast %199 : vector<1x256xf32> to vector<4x256xf32>
    %202 = arith.mulf %200, %201 : vector<4x256xf32>
    %203 = arith.addf %197, %202 : vector<4x256xf32>
    %c0_63 = arith.constant 0 : index
    %c2_64 = arith.constant 2 : index
    %204 = vector.load %arg2[%c0_63, %c2_64] : memref<4x12xf32, #tpu.memory_space<vmem>>, vector<4x1xf32>
    %205 = vector.extract_strided_slice %184 {offsets = [2, 0], sizes = [1, 256], strides = [1, 1]} : vector<4x256xf32> to vector<1x256xf32>
    %206 = vector.broadcast %204 : vector<4x1xf32> to vector<4x256xf32>
    %207 = vector.broadcast %205 : vector<1x256xf32> to vector<4x256xf32>
    %208 = arith.mulf %206, %207 : vector<4x256xf32>
    %209 = arith.addf %203, %208 : vector<4x256xf32>
    %c0_65 = arith.constant 0 : index
    %c3_66 = arith.constant 3 : index
    %210 = vector.load %arg2[%c0_65, %c3_66] : memref<4x12xf32, #tpu.memory_space<vmem>>, vector<4x1xf32>
    %211 = vector.extract_strided_slice %184 {offsets = [3, 0], sizes = [1, 256], strides = [1, 1]} : vector<4x256xf32> to vector<1x256xf32>
    %212 = vector.broadcast %210 : vector<4x1xf32> to vector<4x256xf32>
    %213 = vector.broadcast %211 : vector<1x256xf32> to vector<4x256xf32>
    %214 = arith.mulf %212, %213 : vector<4x256xf32>
    %215 = arith.addf %209, %214 : vector<4x256xf32>
    %c0_67 = arith.constant 0 : index
    %c4_68 = arith.constant 4 : index
    %216 = vector.load %arg2[%c0_67, %c4_68] : memref<4x12xf32, #tpu.memory_space<vmem>>, vector<4x1xf32>
    %217 = vector.extract_strided_slice %179 {offsets = [0, 0], sizes = [1, 256], strides = [1, 1]} : vector<4x256xf32> to vector<1x256xf32>
    %218 = vector.broadcast %216 : vector<4x1xf32> to vector<4x256xf32>
    %219 = vector.broadcast %217 : vector<1x256xf32> to vector<4x256xf32>
    %220 = arith.mulf %218, %219 : vector<4x256xf32>
    %221 = arith.addf %215, %220 : vector<4x256xf32>
    %c0_69 = arith.constant 0 : index
    %c5_70 = arith.constant 5 : index
    %222 = vector.load %arg2[%c0_69, %c5_70] : memref<4x12xf32, #tpu.memory_space<vmem>>, vector<4x1xf32>
    %223 = vector.extract_strided_slice %179 {offsets = [1, 0], sizes = [1, 256], strides = [1, 1]} : vector<4x256xf32> to vector<1x256xf32>
    %224 = vector.broadcast %222 : vector<4x1xf32> to vector<4x256xf32>
    %225 = vector.broadcast %223 : vector<1x256xf32> to vector<4x256xf32>
    %226 = arith.mulf %224, %225 : vector<4x256xf32>
    %227 = arith.addf %221, %226 : vector<4x256xf32>
    %c0_71 = arith.constant 0 : index
    %c6_72 = arith.constant 6 : index
    %228 = vector.load %arg2[%c0_71, %c6_72] : memref<4x12xf32, #tpu.memory_space<vmem>>, vector<4x1xf32>
    %229 = vector.extract_strided_slice %179 {offsets = [2, 0], sizes = [1, 256], strides = [1, 1]} : vector<4x256xf32> to vector<1x256xf32>
    %230 = vector.broadcast %228 : vector<4x1xf32> to vector<4x256xf32>
    %231 = vector.broadcast %229 : vector<1x256xf32> to vector<4x256xf32>
    %232 = arith.mulf %230, %231 : vector<4x256xf32>
    %233 = arith.addf %227, %232 : vector<4x256xf32>
    %c0_73 = arith.constant 0 : index
    %c7_74 = arith.constant 7 : index
    %234 = vector.load %arg2[%c0_73, %c7_74] : memref<4x12xf32, #tpu.memory_space<vmem>>, vector<4x1xf32>
    %235 = vector.extract_strided_slice %179 {offsets = [3, 0], sizes = [1, 256], strides = [1, 1]} : vector<4x256xf32> to vector<1x256xf32>
    %236 = vector.broadcast %234 : vector<4x1xf32> to vector<4x256xf32>
    %237 = vector.broadcast %235 : vector<1x256xf32> to vector<4x256xf32>
    %238 = arith.mulf %236, %237 : vector<4x256xf32>
    %239 = arith.addf %233, %238 : vector<4x256xf32>
    %c0_75 = arith.constant 0 : index
    %c8_76 = arith.constant 8 : index
    %240 = vector.load %arg2[%c0_75, %c8_76] : memref<4x12xf32, #tpu.memory_space<vmem>>, vector<4x1xf32>
    %241 = vector.extract_strided_slice %188 {offsets = [0, 0], sizes = [1, 256], strides = [1, 1]} : vector<4x256xf32> to vector<1x256xf32>
    %242 = vector.broadcast %240 : vector<4x1xf32> to vector<4x256xf32>
    %243 = vector.broadcast %241 : vector<1x256xf32> to vector<4x256xf32>
    %244 = arith.mulf %242, %243 : vector<4x256xf32>
    %245 = arith.addf %239, %244 : vector<4x256xf32>
    %c0_77 = arith.constant 0 : index
    %c9_78 = arith.constant 9 : index
    %246 = vector.load %arg2[%c0_77, %c9_78] : memref<4x12xf32, #tpu.memory_space<vmem>>, vector<4x1xf32>
    %247 = vector.extract_strided_slice %188 {offsets = [1, 0], sizes = [1, 256], strides = [1, 1]} : vector<4x256xf32> to vector<1x256xf32>
    %248 = vector.broadcast %246 : vector<4x1xf32> to vector<4x256xf32>
    %249 = vector.broadcast %247 : vector<1x256xf32> to vector<4x256xf32>
    %250 = arith.mulf %248, %249 : vector<4x256xf32>
    %251 = arith.addf %245, %250 : vector<4x256xf32>
    %c0_79 = arith.constant 0 : index
    %c10_80 = arith.constant 10 : index
    %252 = vector.load %arg2[%c0_79, %c10_80] : memref<4x12xf32, #tpu.memory_space<vmem>>, vector<4x1xf32>
    %253 = vector.extract_strided_slice %188 {offsets = [2, 0], sizes = [1, 256], strides = [1, 1]} : vector<4x256xf32> to vector<1x256xf32>
    %254 = vector.broadcast %252 : vector<4x1xf32> to vector<4x256xf32>
    %255 = vector.broadcast %253 : vector<1x256xf32> to vector<4x256xf32>
    %256 = arith.mulf %254, %255 : vector<4x256xf32>
    %257 = arith.addf %251, %256 : vector<4x256xf32>
    %c0_81 = arith.constant 0 : index
    %c11_82 = arith.constant 11 : index
    %258 = vector.load %arg2[%c0_81, %c11_82] : memref<4x12xf32, #tpu.memory_space<vmem>>, vector<4x1xf32>
    %259 = vector.extract_strided_slice %188 {offsets = [3, 0], sizes = [1, 256], strides = [1, 1]} : vector<4x256xf32> to vector<1x256xf32>
    %260 = vector.broadcast %258 : vector<4x1xf32> to vector<4x256xf32>
    %261 = vector.broadcast %259 : vector<1x256xf32> to vector<4x256xf32>
    %262 = arith.mulf %260, %261 : vector<4x256xf32>
    %263 = arith.addf %257, %262 : vector<4x256xf32>
    %cst_83 = arith.constant 0.000000e+00 : f32
    %264 = vector.broadcast %cst_83 : f32 to vector<4x256xf32>
    %c16_i32_84 = arith.constant 16 : i32
    %265 = tpu.dynamic_rotate %263 by %c16_i32_84 dim 1 : vector<4x256xf32>, i32 -> vector<4x256xf32>
    %266 = vector.shape_cast %2 : vector<1x256xi1> to vector<1x256xi1>
    %267 = vector.broadcast %266 : vector<1x256xi1> to vector<4x256xi1>
    %268 = arith.select %267, %265, %264 : vector<4x256xi1>, vector<4x256xf32>
    %c240_i32_85 = arith.constant 240 : i32
    %269 = tpu.dynamic_rotate %263 by %c240_i32_85 dim 1 : vector<4x256xf32>, i32 -> vector<4x256xf32>
    %270 = vector.shape_cast %4 : vector<1x256xi1> to vector<1x256xi1>
    %271 = vector.broadcast %270 : vector<1x256xi1> to vector<4x256xi1>
    %272 = arith.select %271, %269, %264 : vector<4x256xi1>, vector<4x256xf32>
    %c0_86 = arith.constant 0 : index
    %c0_87 = arith.constant 0 : index
    %273 = vector.load %arg5[%c0_86, %c0_87] : memref<8x1xf32, #tpu.memory_space<vmem>>, vector<8x1xf32>
    %274 = vector.shape_cast %273 : vector<8x1xf32> to vector<8x1xf32>
    %275 = vector.broadcast %274 : vector<8x1xf32> to vector<8x256xf32>
    %c0_88 = arith.constant 0 : index
    %c0_89 = arith.constant 0 : index
    %276 = vector.load %arg4[%c0_88, %c0_89] : memref<8x12xf32, #tpu.memory_space<vmem>>, vector<8x1xf32>
    %277 = vector.extract_strided_slice %268 {offsets = [0, 0], sizes = [1, 256], strides = [1, 1]} : vector<4x256xf32> to vector<1x256xf32>
    %278 = vector.broadcast %276 : vector<8x1xf32> to vector<8x256xf32>
    %279 = vector.broadcast %277 : vector<1x256xf32> to vector<8x256xf32>
    %280 = arith.mulf %278, %279 : vector<8x256xf32>
    %281 = arith.addf %275, %280 : vector<8x256xf32>
    %c0_90 = arith.constant 0 : index
    %c1_91 = arith.constant 1 : index
    %282 = vector.load %arg4[%c0_90, %c1_91] : memref<8x12xf32, #tpu.memory_space<vmem>>, vector<8x1xf32>
    %283 = vector.extract_strided_slice %268 {offsets = [1, 0], sizes = [1, 256], strides = [1, 1]} : vector<4x256xf32> to vector<1x256xf32>
    %284 = vector.broadcast %282 : vector<8x1xf32> to vector<8x256xf32>
    %285 = vector.broadcast %283 : vector<1x256xf32> to vector<8x256xf32>
    %286 = arith.mulf %284, %285 : vector<8x256xf32>
    %287 = arith.addf %281, %286 : vector<8x256xf32>
    %c0_92 = arith.constant 0 : index
    %c2_93 = arith.constant 2 : index
    %288 = vector.load %arg4[%c0_92, %c2_93] : memref<8x12xf32, #tpu.memory_space<vmem>>, vector<8x1xf32>
    %289 = vector.extract_strided_slice %268 {offsets = [2, 0], sizes = [1, 256], strides = [1, 1]} : vector<4x256xf32> to vector<1x256xf32>
    %290 = vector.broadcast %288 : vector<8x1xf32> to vector<8x256xf32>
    %291 = vector.broadcast %289 : vector<1x256xf32> to vector<8x256xf32>
    %292 = arith.mulf %290, %291 : vector<8x256xf32>
    %293 = arith.addf %287, %292 : vector<8x256xf32>
    %c0_94 = arith.constant 0 : index
    %c3_95 = arith.constant 3 : index
    %294 = vector.load %arg4[%c0_94, %c3_95] : memref<8x12xf32, #tpu.memory_space<vmem>>, vector<8x1xf32>
    %295 = vector.extract_strided_slice %268 {offsets = [3, 0], sizes = [1, 256], strides = [1, 1]} : vector<4x256xf32> to vector<1x256xf32>
    %296 = vector.broadcast %294 : vector<8x1xf32> to vector<8x256xf32>
    %297 = vector.broadcast %295 : vector<1x256xf32> to vector<8x256xf32>
    %298 = arith.mulf %296, %297 : vector<8x256xf32>
    %299 = arith.addf %293, %298 : vector<8x256xf32>
    %c0_96 = arith.constant 0 : index
    %c4_97 = arith.constant 4 : index
    %300 = vector.load %arg4[%c0_96, %c4_97] : memref<8x12xf32, #tpu.memory_space<vmem>>, vector<8x1xf32>
    %301 = vector.extract_strided_slice %263 {offsets = [0, 0], sizes = [1, 256], strides = [1, 1]} : vector<4x256xf32> to vector<1x256xf32>
    %302 = vector.broadcast %300 : vector<8x1xf32> to vector<8x256xf32>
    %303 = vector.broadcast %301 : vector<1x256xf32> to vector<8x256xf32>
    %304 = arith.mulf %302, %303 : vector<8x256xf32>
    %305 = arith.addf %299, %304 : vector<8x256xf32>
    %c0_98 = arith.constant 0 : index
    %c5_99 = arith.constant 5 : index
    %306 = vector.load %arg4[%c0_98, %c5_99] : memref<8x12xf32, #tpu.memory_space<vmem>>, vector<8x1xf32>
    %307 = vector.extract_strided_slice %263 {offsets = [1, 0], sizes = [1, 256], strides = [1, 1]} : vector<4x256xf32> to vector<1x256xf32>
    %308 = vector.broadcast %306 : vector<8x1xf32> to vector<8x256xf32>
    %309 = vector.broadcast %307 : vector<1x256xf32> to vector<8x256xf32>
    %310 = arith.mulf %308, %309 : vector<8x256xf32>
    %311 = arith.addf %305, %310 : vector<8x256xf32>
    %c0_100 = arith.constant 0 : index
    %c6_101 = arith.constant 6 : index
    %312 = vector.load %arg4[%c0_100, %c6_101] : memref<8x12xf32, #tpu.memory_space<vmem>>, vector<8x1xf32>
    %313 = vector.extract_strided_slice %263 {offsets = [2, 0], sizes = [1, 256], strides = [1, 1]} : vector<4x256xf32> to vector<1x256xf32>
    %314 = vector.broadcast %312 : vector<8x1xf32> to vector<8x256xf32>
    %315 = vector.broadcast %313 : vector<1x256xf32> to vector<8x256xf32>
    %316 = arith.mulf %314, %315 : vector<8x256xf32>
    %317 = arith.addf %311, %316 : vector<8x256xf32>
    %c0_102 = arith.constant 0 : index
    %c7_103 = arith.constant 7 : index
    %318 = vector.load %arg4[%c0_102, %c7_103] : memref<8x12xf32, #tpu.memory_space<vmem>>, vector<8x1xf32>
    %319 = vector.extract_strided_slice %263 {offsets = [3, 0], sizes = [1, 256], strides = [1, 1]} : vector<4x256xf32> to vector<1x256xf32>
    %320 = vector.broadcast %318 : vector<8x1xf32> to vector<8x256xf32>
    %321 = vector.broadcast %319 : vector<1x256xf32> to vector<8x256xf32>
    %322 = arith.mulf %320, %321 : vector<8x256xf32>
    %323 = arith.addf %317, %322 : vector<8x256xf32>
    %c0_104 = arith.constant 0 : index
    %c8_105 = arith.constant 8 : index
    %324 = vector.load %arg4[%c0_104, %c8_105] : memref<8x12xf32, #tpu.memory_space<vmem>>, vector<8x1xf32>
    %325 = vector.extract_strided_slice %272 {offsets = [0, 0], sizes = [1, 256], strides = [1, 1]} : vector<4x256xf32> to vector<1x256xf32>
    %326 = vector.broadcast %324 : vector<8x1xf32> to vector<8x256xf32>
    %327 = vector.broadcast %325 : vector<1x256xf32> to vector<8x256xf32>
    %328 = arith.mulf %326, %327 : vector<8x256xf32>
    %329 = arith.addf %323, %328 : vector<8x256xf32>
    %c0_106 = arith.constant 0 : index
    %c9_107 = arith.constant 9 : index
    %330 = vector.load %arg4[%c0_106, %c9_107] : memref<8x12xf32, #tpu.memory_space<vmem>>, vector<8x1xf32>
    %331 = vector.extract_strided_slice %272 {offsets = [1, 0], sizes = [1, 256], strides = [1, 1]} : vector<4x256xf32> to vector<1x256xf32>
    %332 = vector.broadcast %330 : vector<8x1xf32> to vector<8x256xf32>
    %333 = vector.broadcast %331 : vector<1x256xf32> to vector<8x256xf32>
    %334 = arith.mulf %332, %333 : vector<8x256xf32>
    %335 = arith.addf %329, %334 : vector<8x256xf32>
    %c0_108 = arith.constant 0 : index
    %c10_109 = arith.constant 10 : index
    %336 = vector.load %arg4[%c0_108, %c10_109] : memref<8x12xf32, #tpu.memory_space<vmem>>, vector<8x1xf32>
    %337 = vector.extract_strided_slice %272 {offsets = [2, 0], sizes = [1, 256], strides = [1, 1]} : vector<4x256xf32> to vector<1x256xf32>
    %338 = vector.broadcast %336 : vector<8x1xf32> to vector<8x256xf32>
    %339 = vector.broadcast %337 : vector<1x256xf32> to vector<8x256xf32>
    %340 = arith.mulf %338, %339 : vector<8x256xf32>
    %341 = arith.addf %335, %340 : vector<8x256xf32>
    %c0_110 = arith.constant 0 : index
    %c11_111 = arith.constant 11 : index
    %342 = vector.load %arg4[%c0_110, %c11_111] : memref<8x12xf32, #tpu.memory_space<vmem>>, vector<8x1xf32>
    %343 = vector.extract_strided_slice %272 {offsets = [3, 0], sizes = [1, 256], strides = [1, 1]} : vector<4x256xf32> to vector<1x256xf32>
    %344 = vector.broadcast %342 : vector<8x1xf32> to vector<8x256xf32>
    %345 = vector.broadcast %343 : vector<1x256xf32> to vector<8x256xf32>
    %346 = arith.mulf %344, %345 : vector<8x256xf32>
    %347 = arith.addf %341, %346 : vector<8x256xf32>
    %c1_112 = arith.constant 1 : index
    %c0_113 = arith.constant 0 : index
    %c0_114 = arith.constant 0 : index
    %348 = vector.load %arg6[%c1_112, %c0_113, %c0_114] : memref<2x8x256xf32, #tpu.memory_space<vmem>>, vector<1x8x256xf32>
    %349 = vector.shape_cast %348 : vector<1x8x256xf32> to vector<8x256xf32>
    %350 = vector.shape_cast %347 : vector<8x256xf32> to vector<1x8x256xf32>
    tpu.vector_store %arg6[%c1_112, %c0_113, %c0_114], %350 {strides = array<i32>} : memref<2x8x256xf32, #tpu.memory_space<vmem>>, vector<1x8x256xf32>,
    return
  }
  func.func @transform_0(%arg0: i32) -> (i32, i32, i32) {
    %c0_i32 = arith.constant 0 : i32
    %c0_i32_0 = arith.constant 0 : i32
    %c0_i32_1 = arith.constant 0 : i32
    return %arg0, %c0_i32, %c0_i32_0 : i32, i32, i32
  }
  func.func @transform_1(%arg0: i32) -> (i32, i32) {
    %c0_i32 = arith.constant 0 : i32
    %c0_i32_0 = arith.constant 0 : i32
    %c0_i32_1 = arith.constant 0 : i32
    return %c0_i32, %c0_i32_0 : i32, i32
  }
  func.func @transform_2(%arg0: i32) -> (i32, i32) {
    %c0_i32 = arith.constant 0 : i32
    %c0_i32_0 = arith.constant 0 : i32
    %c0_i32_1 = arith.constant 0 : i32
    return %c0_i32, %c0_i32_0 : i32, i32
  }
  func.func @transform_3(%arg0: i32) -> (i32, i32) {
    %c0_i32 = arith.constant 0 : i32
    %c0_i32_0 = arith.constant 0 : i32
    %c0_i32_1 = arith.constant 0 : i32
    return %c0_i32, %c0_i32_0 : i32, i32
  }
  func.func @transform_4(%arg0: i32) -> (i32, i32) {
    %c0_i32 = arith.constant 0 : i32
    %c0_i32_0 = arith.constant 0 : i32
    %c0_i32_1 = arith.constant 0 : i32
    return %c0_i32, %c0_i32_0 : i32, i32
  }
  func.func @transform_5(%arg0: i32) -> (i32, i32, i32) {
    %c0_i32 = arith.constant 0 : i32
    %c0_i32_0 = arith.constant 0 : i32
    %c0_i32_1 = arith.constant 0 : i32
    return %arg0, %c0_i32, %c0_i32_0 : i32, i32, i32
  }
}

</mosaic_0001>

<bundles_post_ra>
// kernel: disentanglement_forward.1
= control target key start
LH: loop header
LB: loop body
LE: loop exit
PB: predicated region body
PF: predicated region fallthrough
CT: control target
= control target key end

     0   :  { %v746_v0 = vmov 0   ;;  %v747_v2 = vmov 2   ;;  %v748_v5 = vmov 1   ;;  %s749_s24 = smov 16   ;;  %v750_v8 = vmov 4   ;;  %s752_s27 = smov 112   ;;  %s1120_s2 = inlined_call_operand.vmem [shape: f32[4,1], index: 2, kind: input, shape index: {}]   ;;  %s1121_s1 = inlined_call_operand.vmem [shape: f32[4,12], index: 1, kind: input, shape index: {}]   ;;  %s1122_s0 = inlined_call_operand.vmem [shape: f32[2,4,256], index: 0, kind: input, shape index: {}]   ;;  %s1123_s3 = inlined_call_operand.vmem [shape: f32[8,12], index: 3, kind: input, shape index: {}]   ;;  %s1124_s4 = inlined_call_operand.vmem [shape: f32[8,1], index: 4, kind: input, shape index: {}]   ;;  %s1125_s5 = inlined_call_operand.vmem [shape: f32[2,8,256], index: 5, kind: output, shape index: {}]  }
   0x1   :  { %696 = vset.pattern.permute.xlu2 %v746_v0  ;;  %v65_v1 = vld [vmem:[%s1120_s2] sm:$0xf]  ;;  %698 = vset.pattern.permute.xlu1 %v747_v2  ;;  %v811_v9 = vld [vmem:[%s1122_s0 + $0x8] sm:$0xff]  ;;  %v751_v12 = vmov 3   ;;  %v753_v15 = vmov 5   ;;  %v754_v16 = vmov 6   ;;  %v20_v31 = vlaneseq }
   0x2   :  { %v71_v3 = vld [vmem:[%s1121_s1] sm:$0xf]  ;;  %68 = vperm.xlu2 %696, %v65_v1   ;;  %697 = vset.pattern.permute.xlu0 %v748_v5  ;;  %v755_v17 = vmov 8   ;;  %v756_v18 = vmov 7   ;;  %v757_v19 = vmov 11   ;;  %v758_v20 = vmov 10  }
   0x3   :  { %v801_v4 = vld [vmem:[%s1122_s0] sm:$0xff]  ;;  %94 = vperm.xlu1 %698, %v71_v3   ;;  %v759_v21 = vmov 9   ;;  %v890_v34 = vand.u32 127, %v20_v31 }
   0x4   :  { %29 = vst [vmem:[#allocation1] ss:$2 sm:$0xff] %v801_v4  ;;  %v831_v22 = vld [vmem:[%s1123_s3] sm:$0xff]  ;;  %v117_v52 = vperm.slane %v801_v4, 0  ;;  %v118_v53 = vperm.slane %v801_v4, 4  ;;  %v131_v62 = vperm.slane %v801_v4, 1 }
   0x5   :  { %v846_v23 = vld [vmem:[%s1124_s4] sm:$0xff]  ;;  %vm38_vm0 = vcmp.lt.s32.totalorder %v890_v34, 16  ;;  %vm23_vm1 = vcmp.ge.s32.totalorder %v890_v34, 16  ;;  %v132_v63 = vperm.slane %v801_v4, 5  ;;  %v145_v31 = vperm.slane %v801_v4, 2 }
   0x6   :  { %v862_v25 = vld [vmem:[%s1121_s1] sm:$0xf]  ;;  %vm56_vm2 = vcmp.lt.s32.totalorder %v890_v34, 112 }
   0x7   :  { %v384_v27 = vld [vmem:[%s1120_s2] sm:$0xf] }
   0xa   :  { %74 = vperm.xlu2 %696, %v71_v3  }
   0xb   :  { %v30_v6 = vld.sshfl [vmem:[#allocation1] sm:$0xff pattern:$0x75316420]  ;;  %v31_v7 = vld.sshfl [vmem:[#allocation1 + $0x8] sm:$0xff pattern:$0x75316420]  ;;  %700 = vset.pattern.permute.xlu1 %v750_v8 }
   0xc   :  { %34 = vrot.lane.b32.xlu0 %v30_v6, %s749_s24  ;;  %47 = vst [vmem:[#allocation1] ss:$2 sm:$0xff] %v801_v4  ;;  %v122_v6 = vperm.slane %v118_v53, 0 }
  0x12   :  { %699 = vset.pattern.permute.xlu2 %v751_v12 }
  0x13   :  { %v48_v10 = vld.sshfl [vmem:[#allocation1] sm:$0xff pattern:$0x75316420]  ;;  %v49_v11 = vld.sshfl [vmem:[#allocation1 + $0x8] sm:$0xff pattern:$0x75316420]  ;;  %104 = vperm.xlu2 %699, %v71_v3  }
  0x14   :  { %36 = vrot.lane.b32.xlu0 %v31_v7, %s749_s24  ;;  %358 = vst [vmem:[#allocation1] ss:$2 sm:$0xff] %v811_v9  ;;  %52 = vrot.lane.b32.xlu1 %v48_v10, %s752_s27 }
  0x1b   :  { %v817_v13 = vld.sshfl [vmem:[#allocation1] sm:$0xff pattern:$0x75316420]  ;;  %v360_v14 = vld.sshfl [vmem:[#allocation1 + $0x8] sm:$0xff pattern:$0x75316420]  ;;  %701 = vset.pattern.permute.xlu2 %v753_v15 }
  0x1c   :  { %84 = vperm.xlu0 %697, %v71_v3   ;;  %371 = vst [vmem:[#allocation1] ss:$2 sm:$0xff] %v811_v9  ;;  %54 = vrot.lane.b32.xlu1 %v49_v11, %s752_s27 }
  0x1d   :  { %128 = vperm.xlu2 %701, %v71_v3  }
  0x23   :  { %v372_v24 = vld.sshfl [vmem:[#allocation1] sm:$0xff pattern:$0x75316420]  ;;  %v373_v29 = vld.sshfl [vmem:[#allocation1 + $0x8] sm:$0xff pattern:$0x75316420] }
  0x24   :  { %702 = vset.pattern.permute.xlu0 %v754_v16  ;;  %114 = vperm.xlu1 %700, %v71_v3  }
  0x25   :  { %142 = vperm.xlu0 %702, %v71_v3   ;;  %704 = vset.pattern.permute.xlu2 %v755_v17 }
  0x26   :  { %170 = vperm.xlu2 %704, %v71_v3  }
  0x2c   :  { %703 = vset.pattern.permute.xlu1 %v756_v18 }
  0x2d   :  { %707 = vset.pattern.permute.xlu0 %v757_v19  ;;  %156 = vperm.xlu1 %703, %v71_v3  }
  0x2e   :  { %200 = vperm.xlu0 %707, %v71_v3   ;;  %706 = vset.pattern.permute.xlu2 %v758_v20 }
  0x2f   :  { %190 = vperm.xlu2 %706, %v71_v3  }
  0x35   :  { %705 = vset.pattern.permute.xlu1 %v759_v21 }
  0x36   :  { %712 = vset.pattern.permute.xlu0 %v750_v8  ;;  %180 = vperm.xlu1 %705, %v71_v3  }
  0x37   :  { %274 = vperm.xlu0 %712, %v831_v22   ;;  %709 = vset.pattern.permute.xlu2 %v748_v5 }
  0x38   :  { %244 = vperm.xlu2 %709, %v831_v22  }
  0x3e   :  { %708 = vset.pattern.permute.xlu1 %v746_v0 }
  0x3f   :  { %717 = vset.pattern.permute.xlu0 %v759_v21  ;;  %234 = vperm.xlu1 %708, %v831_v22  }
  0x40   :  { %324 = vperm.xlu0 %717, %v831_v22   ;;  %711 = vset.pattern.permute.xlu2 %v751_v12 }
  0x41   :  { %264 = vperm.xlu2 %711, %v831_v22  }
  0x47   :  { %710 = vset.pattern.permute.xlu1 %v747_v2 }
  0x48   :  { %718 = vset.pattern.permute.xlu0 %v746_v0  ;;  %254 = vperm.xlu1 %710, %v831_v22  }
  0x49   :  { %228 = vperm.xlu0 %718, %v846_v23   ;;  %714 = vset.pattern.permute.xlu2 %v754_v16 }
  0x4a   :  { %294 = vperm.xlu2 %714, %v831_v22  }
  0x50   :  { %713 = vset.pattern.permute.xlu1 %v753_v15 }
  0x51   :  { %376 = vrot.lane.b32.xlu0 %v372_v24, %s752_s27  ;;  %284 = vperm.xlu1 %713, %v831_v22   ;;  %v135_v24 = vperm.slane %v131_v62, 1 }
  0x52   :  { %716 = vset.pattern.permute.xlu2 %v755_v17 }
  0x53   :  { %314 = vperm.xlu2 %716, %v831_v22  }
  0x59   :  { %393 = vperm.xlu0 %718, %v862_v25   ;;  %715 = vset.pattern.permute.xlu1 %v756_v18 }
  0x5a   :  { %304 = vperm.xlu1 %715, %v831_v22  }
  0x5b   :  { %720 = vset.pattern.permute.xlu2 %v757_v19 }
  0x5c   :  { %344 = vperm.xlu2 %720, %v831_v22   ;;  %v69_v26 = vpop.permute.xlu2 %68 }
  0x61   :  { %726 = vset.pattern.permute.xlu0 %v753_v15 }
  0x62   :  { %447 = vperm.xlu0 %726, %v862_v25   ;;  %719 = vset.pattern.permute.xlu1 %v758_v20 }
  0x63   :  { %334 = vperm.xlu1 %719, %v831_v22  }
  0x64   :  { %365 = vrot.lane.b32.xlu2 %v360_v14, %s749_s24  ;;  %v75_v28 = vpop.permute.xlu2 %74 }
  0x65   :  { %721 = vset.pattern.permute.xlu2 %v746_v0 }
  0x6a   :  { %731 = vset.pattern.permute.xlu0 %v758_v20 }
  0x6b   :  { %509 = vperm.xlu0 %731, %v862_v25   ;;  %363 = vrot.lane.b32.xlu1 %v817_v13, %s749_s24 }
  0x6c   :  { %387 = vperm.xlu2 %721, %v384_v27   ;;  %722 = vset.pattern.permute.xlu1 %v748_v5 }
  0x6d   :  { %v105_v30 = vpop.permute.xlu2 %104 }
  0x73   :  { %735 = vset.pattern.permute.xlu0 %v748_v5  ;;  %378 = vrot.lane.b32.xlu1 %v373_v29, %s752_s27  ;;  %v121_v5 = vperm.slane %v117_v52, 0 }
  0x74   :  { %723 = vset.pattern.permute.xlu2 %v747_v2 }
  0x75   :  { %413 = vperm.xlu2 %723, %v862_v25   ;;  %v95_v32 = vpop.permute.xlu1 %94 }
  0x77   :  { %v892_v35 = vpop.permute.xlu2 %128 }
  0x7b   :  { %403 = vperm.xlu1 %722, %v862_v25  }
  0x7d   :  { %725 = vset.pattern.permute.xlu2 %v750_v8 }
  0x7e   :  { %v35_v33 = vpop.permute.xlu0 %34  ;;  %433 = vperm.xlu2 %725, %v862_v25  }
  0x80   :  { %v908_v45 = vpop.permute.xlu2 %170 }
  0x83   :  { %724 = vset.pattern.permute.xlu1 %v751_v12 }
  0x84   :  { %423 = vperm.xlu1 %724, %v862_v25  }
  0x86   :  { %v37_v36 = vpop.permute.xlu0 %36  ;;  %v902_v39 = vpop.permute.xlu1 %52  ;;  %728 = vset.pattern.permute.xlu2 %v756_v18 }
  0x87   :  { %v39_v37 = vsel %vm38_vm0, %v35_v33, %v37_v36  ;;  %v40_v38 = vsel %vm38_vm0, %v37_v36, %v35_v33  ;;  %475 = vperm.xlu2 %728, %v862_v25   ;;  %v925_v33 = vadd.s32 128, %v890_v34 }
  0x88   :  { %v45_v40 = vsel %vm23_vm1, %v40_v38, 0.0  ;;  %v78_v41 = vperm.slane %v39_v37, 0  ;;  %v88_v44 = vperm.slane %v39_v37, 1  ;;  %v98_v55 = vperm.slane %v39_v37, 2 }
  0x89   :  { %v77_v42 = vperm.slane %v45_v40, 0  ;;  %v87_v43 = vperm.slane %v45_v40, 1  ;;  %v97_v54 = vperm.slane %v45_v40, 2  ;;  %v107_v58 = vperm.slane %v45_v40, 3  ;;  %v918_v11 = vpop.permute.xlu2 %190 }
  0x8a   :  { %v80_v47 = vmul.f32 %v78_v41, %v75_v28  ;;  %v108_v59 = vperm.slane %v39_v37, 3  ;;  %v100_v3 = vmul.f32 %v98_v55, %v95_v32  ;;  %v160_v38 = vperm.slane %v801_v4, 7 }
  0x8b   :  { %v79_v46 = vmul.f32 %v77_v42, %v75_v28  ;;  %v99_v1 = vmul.f32 %v97_v54, %v95_v32  ;;  %v109_v13 = vmul.f32 %v107_v58, %v105_v30  ;;  %v146_v32 = vperm.slane %v801_v4, 6 }
  0x8c   :  { %727 = vset.pattern.permute.xlu1 %v754_v16  ;;  %v82_v57 = vadd.f32 %v80_v47, %v69_v26  ;;  %v110_v14 = vmul.f32 %v108_v59, %v105_v30  ;;  %v159_v30 = vperm.slane %v801_v4, 3  ;;  %v137_v40 = vmul.f32 %v135_v24, %v892_v35 }
  0x8d   :  { %461 = vperm.xlu1 %727, %v862_v25   ;;  %v81_v56 = vadd.f32 %v79_v46, %v69_v26  ;;  %v136_v26 = vperm.slane %v132_v63, 1  ;;  %v150_v46 = vperm.slane %v146_v32, 2  ;;  %vm26_vm3 = vcmp.lt.s32.totalorder %v925_v33, 240 }
  0x8e   :  { %v85_v48 = vpop.permute.xlu0 %84  ;;  %v55_v51 = vpop.permute.xlu1 %54  ;;  %v164_v4 = vperm.slane %v160_v38, 3 }
  0x8f   :  { %v89_v49 = vmul.f32 %v87_v43, %v85_v48  ;;  %v90_v50 = vmul.f32 %v88_v44, %v85_v48  ;;  %730 = vset.pattern.permute.xlu2 %v759_v21  ;;  %v138_v41 = vmul.f32 %v136_v26, %v892_v35  ;;  %v149_v44 = vperm.slane %v145_v31, 2 }
  0x90   :  { %499 = vperm.xlu2 %730, %v862_v25   ;;  %v58_v47 = vsel %vm56_vm2, %v55_v51, %v902_v39 }
  0x91   :  { %v91_v60 = vadd.f32 %v89_v49, %v81_v56  ;;  %v92_v61 = vadd.f32 %v90_v50, %v82_v57  ;;  %v163_v49 = vperm.slane %v159_v30, 3  ;;  %v57_v56 = vsel %vm56_vm2, %v902_v39, %v55_v51 }
  0x92   :  { %v937_v48 = vpop.permute.xlu2 %244  ;;  %v64_v57 = vsel %vm26_vm3, %v58_v47, 0.0  ;;  %v183_v39 = vperm.slane %v57_v56, 1 }
  0x93   :  { %v101_v7 = vadd.f32 %v99_v1, %v91_v60  ;;  %v102_v10 = vadd.f32 %v100_v3, %v92_v61  ;;  %v173_v60 = vperm.slane %v57_v56, 0  ;;  %v174_v61 = vperm.slane %v64_v57, 0 }
  0x94   :  { %v184_v51 = vperm.slane %v64_v57, 1  ;;  %v204_v31 = vperm.slane %v64_v57, 3 }
  0x95   :  { %729 = vset.pattern.permute.xlu1 %v755_v17  ;;  %v111_v36 = vadd.f32 %v109_v13, %v101_v7  ;;  %v112_v37 = vadd.f32 %v110_v14, %v102_v10  ;;  %v176_v10 = vmul.f32 %v174_v61, %v908_v45 }
  0x96   :  { %v115_v27 = vpop.permute.xlu1 %114  ;;  %489 = vperm.xlu1 %729, %v862_v25  }
  0x97   :  { %v123_v28 = vmul.f32 %v121_v5, %v115_v27  ;;  %v124_v29 = vmul.f32 %v122_v6, %v115_v27  ;;  %v143_v50 = vpop.permute.xlu0 %142  ;;  %v193_v5 = vperm.slane %v57_v56, 2  ;;  %v194_v6 = vperm.slane %v64_v57, 2 }
  0x98   :  { %734 = vset.pattern.permute.xlu2 %v746_v0  ;;  %v151_v53 = vmul.f32 %v149_v44, %v143_v50  ;;  %v152_v54 = vmul.f32 %v150_v46, %v143_v50 }
  0x99   :  { %v125_v42 = vadd.f32 %v123_v28, %v111_v36  ;;  %v126_v43 = vadd.f32 %v124_v29, %v112_v37  ;;  %v203_v29 = vperm.slane %v57_v56, 3  ;;  %v195_v32 = vmul.f32 %v193_v5, %v918_v11 }
  0x9a   :  { %v196_v36 = vmul.f32 %v194_v6, %v918_v11 }
  0x9b   :  { %v139_v35 = vadd.f32 %v137_v40, %v125_v42  ;;  %v140_v52 = vadd.f32 %v138_v41, %v126_v43  ;;  %v946_v7 = vpop.permute.xlu2 %264 }
  0x9d   :  { %v153_v62 = vadd.f32 %v151_v53, %v139_v35  ;;  %v154_v63 = vadd.f32 %v152_v54, %v140_v52 }
  0x9e   :  { %732 = vset.pattern.permute.xlu1 %v757_v19 }
  0x9f   :  { %v157_v55 = vpop.permute.xlu1 %156  ;;  %519 = vperm.xlu1 %732, %v862_v25   ;;  %v175_v25 = vmul.f32 %v173_v60, %v908_v45 }
  0xa0   :  { %v165_v58 = vmul.f32 %v163_v49, %v157_v55  ;;  %v166_v59 = vmul.f32 %v164_v4, %v157_v55  ;;  %v201_v13 = vpop.permute.xlu0 %200 }
  0xa1   :  { %v205_v38 = vmul.f32 %v203_v29, %v201_v13  ;;  %v206_v45 = vmul.f32 %v204_v31, %v201_v13 }
  0xa2   :  { %v167_v1 = vadd.f32 %v165_v58, %v153_v62  ;;  %v168_v3 = vadd.f32 %v166_v59, %v154_v63 }
  0xa4   :  { %v177_v24 = vadd.f32 %v175_v25, %v167_v1  ;;  %v178_v26 = vadd.f32 %v176_v10, %v168_v3  ;;  %v295_v11 = vpop.permute.xlu2 %294 }
  0xa7   :  { %733 = vset.pattern.permute.xlu1 %v746_v0 }
  0xa8   :  { %v181_v14 = vpop.permute.xlu1 %180 }
  0xa9   :  { %v185_v27 = vmul.f32 %v183_v39, %v181_v14  ;;  %v186_v28 = vmul.f32 %v184_v51, %v181_v14  ;;  %v275_v43 = vpop.permute.xlu0 %274 }
  0xab   :  { %v187_v37 = vadd.f32 %v185_v27, %v177_v24  ;;  %v188_v30 = vadd.f32 %v186_v28, %v178_v26 }
  0xad   :  { %v197_v40 = vadd.f32 %v195_v32, %v187_v37  ;;  %v198_v41 = vadd.f32 %v196_v36, %v188_v30  ;;  %v971_v57 = vpop.permute.xlu2 %314 }
  0xaf   :  { %v207_v42 = vadd.f32 %v205_v38, %v197_v40  ;;  %v208_v0 = vadd.f32 %v206_v45, %v198_v41  ;;  %v436_v40 = vperm.slane %v811_v9, 0  ;;  %v437_v41 = vperm.slane %v811_v9, 4 }
  0xb1   :  { %v297_v44 = vperm.slane %v207_v42, 2  ;;  %v298_v46 = vperm.slane %v208_v0, 2  ;;  %v953_v47 = vpop.permute.xlu1 %234  ;;  %211 = vrot.lane.b32.xlu2 %v208_v0, %s749_s24  ;;  %209 = vrot.lane.b32.xlu1 %v207_v42, %s749_s24  ;;  %v277_v49 = vperm.slane %v207_v42, 0  ;;  %v278_v4 = vperm.slane %v208_v0, 0 }
  0xb2   :  { %v287_v55 = vperm.slane %v207_v42, 1  ;;  %v288_v56 = vperm.slane %v208_v0, 1  ;;  %v307_v61 = vperm.slane %v207_v42, 3  ;;  %v308_v62 = vperm.slane %v208_v0, 3  ;;  %v985_v5 = vpop.permute.xlu0 %324 }
  0xb3   :  { %v957_v50 = vmul.f32 %v297_v44, %v295_v11  ;;  %v959_v35 = vmul.f32 %v298_v46, %v295_v11  ;;  %v961_v52 = vmul.f32 %v277_v49, %v275_v43  ;;  %v963_v53 = vmul.f32 %v278_v4, %v275_v43 }
  0xb6   :  { %v979_v1 = vpop.permute.xlu2 %344 }
  0xb9   :  { %219 = vrot.lane.b32.xlu2 %v208_v0, %s752_s27  ;;  %217 = vrot.lane.b32.xlu1 %v207_v42, %s752_s27 }
  0xba   :  { %v967_v54 = vpop.permute.xlu1 %254 }
  0xbb   :  { %v989_v10 = vpop.permute.xlu0 %228 }
  0xbe   :  { %v366_v25 = vpop.permute.xlu2 %365 }
  0xc1   :  { %553 = vperm.xlu2 %734, %v831_v22   ;;  %547 = vperm.xlu1 %733, %v846_v23  }
  0xc3   :  { %v285_v58 = vpop.permute.xlu1 %284  ;;  %v991_v51 = vpop.permute.xlu0 %376 }
  0xc4   :  { %v973_v59 = vmul.f32 %v287_v55, %v285_v58  ;;  %v975_v60 = vmul.f32 %v288_v56, %v285_v58  ;;  %v440_v56 = vperm.slane %v436_v40, 0  ;;  %v441_v58 = vperm.slane %v437_v41, 0 }
  0xc9   :  { %736 = vset.pattern.permute.xlu1 %v747_v2  ;;  %737 = vset.pattern.permute.xlu2 %v751_v12  ;;  %v388_v2 = vpop.permute.xlu2 %387 }
  0xcb   :  { %v394_v31 = vpop.permute.xlu0 %393 }
  0xcc   :  { %v305_v63 = vpop.permute.xlu1 %304 }
  0xcd   :  { %v981_v3 = vmul.f32 %v307_v61, %v305_v63  ;;  %v983_v23 = vmul.f32 %v308_v62, %v305_v63  ;;  %v450_v61 = vperm.slane %v811_v9, 1  ;;  %v451_v62 = vperm.slane %v811_v9, 5 }
  0xd1   :  { %v414_v26 = vpop.permute.xlu2 %413 }
  0xd4   :  { %v448_v41 = vpop.permute.xlu0 %447 }
  0xd5   :  { %v987_v6 = vpop.permute.xlu1 %334 }
  0xd9   :  { %v434_v46 = vpop.permute.xlu2 %433 }
  0xdd   :  { %v364_v39 = vpop.permute.xlu1 %363 }
  0xde   :  { %v368_v12 = vsel %vm38_vm0, %v366_v25, %v364_v39  ;;  %v367_v14 = vsel %vm38_vm0, %v364_v39, %v366_v25 }
  0xdf   :  { %v369_v24 = vsel %vm23_vm1, %v368_v12, 0.0  ;;  %v397_v28 = vperm.slane %v367_v14, 0  ;;  %v407_v36 = vperm.slane %v367_v14, 1  ;;  %v417_v0 = vperm.slane %v367_v14, 2 }
  0xe0   :  { %v396_v27 = vperm.slane %v369_v24, 0  ;;  %v406_v32 = vperm.slane %v369_v24, 1  ;;  %v416_v42 = vperm.slane %v369_v24, 2  ;;  %v426_v11 = vperm.slane %v369_v24, 3 }
  0xe1   :  { %v399_v30 = vmul.f32 %v397_v28, %v394_v31  ;;  %v427_v55 = vperm.slane %v367_v14, 3  ;;  %v419_v39 = vmul.f32 %v417_v0, %v414_v26  ;;  %v455_v24 = vperm.slane %v451_v62, 1 }
  0xe2   :  { %v398_v37 = vmul.f32 %v396_v27, %v394_v31  ;;  %v418_v25 = vmul.f32 %v416_v42, %v414_v26  ;;  %v465_v31 = vperm.slane %v811_v9, 6  ;;  %v442_v14 = vmul.f32 %v440_v56, %v434_v46 }
  0xe3   :  { %v401_v44 = vadd.f32 %v399_v30, %v388_v2  ;;  %v457_v0 = vmul.f32 %v455_v24, %v448_v41 }
  0xe4   :  { %v400_v43 = vadd.f32 %v398_v37, %v388_v2  ;;  %v464_v2 = vperm.slane %v811_v9, 2  ;;  %v469_v26 = vperm.slane %v465_v31, 2 }
  0xe5   :  { %v995_v13 = vpop.permute.xlu1 %378 }
  0xe6   :  { %v468_v40 = vperm.slane %v464_v2, 2  ;;  %v380_v62 = vsel %vm56_vm2, %v991_v51, %v995_v13 }
  0xed   :  { %v404_v29 = vpop.permute.xlu1 %403 }
  0xee   :  { %v408_v38 = vmul.f32 %v406_v32, %v404_v29  ;;  %v409_v45 = vmul.f32 %v407_v36, %v404_v29  ;;  %v454_v32 = vperm.slane %v450_v61, 1  ;;  %v443_v36 = vmul.f32 %v441_v58, %v434_v46 }
  0xef   :  { %v381_v46 = vsel %vm56_vm2, %v995_v13, %v991_v51  ;;  %v512_v51 = vperm.slane %v380_v62, 2 }
  0xf0   :  { %v410_v49 = vadd.f32 %v408_v38, %v400_v43  ;;  %v411_v4 = vadd.f32 %v409_v45, %v401_v44  ;;  %v478_v38 = vperm.slane %v811_v9, 3  ;;  %v479_v45 = vperm.slane %v811_v9, 7  ;;  %v476_v43 = vpop.permute.xlu2 %475 }
  0xf1   :  { %v456_v42 = vmul.f32 %v454_v32, %v448_v41  ;;  %v510_v41 = vpop.permute.xlu0 %509 }
  0xf2   :  { %v420_v28 = vadd.f32 %v418_v25, %v410_v49  ;;  %v421_v29 = vadd.f32 %v419_v39, %v411_v4 }
  0xf6   :  { %v424_v63 = vpop.permute.xlu1 %423 }
  0xf7   :  { %v428_v12 = vmul.f32 %v426_v11, %v424_v63  ;;  %v429_v27 = vmul.f32 %v427_v55, %v424_v63  ;;  %v482_v11 = vperm.slane %v478_v38, 3  ;;  %v483_v55 = vperm.slane %v479_v45, 3 }
  0xf8   :  { %v383_v63 = vsel %vm26_vm3, %v381_v46, 0.0  ;;  %v500_v31 = vpop.permute.xlu2 %499 }
  0xf9   :  { %v430_v37 = vadd.f32 %v428_v12, %v420_v28  ;;  %v431_v30 = vadd.f32 %v429_v27, %v421_v29  ;;  %v484_v25 = vmul.f32 %v482_v11, %v476_v43  ;;  %v485_v39 = vmul.f32 %v483_v55, %v476_v43 }
  0xfa   :  { %v492_v28 = vperm.slane %v380_v62, 0  ;;  %v493_v29 = vperm.slane %v383_v63, 0  ;;  %v513_v13 = vperm.slane %v383_v63, 2  ;;  %v514_v43 = vmul.f32 %v512_v51, %v510_v41 }
  0xfb   :  { %v444_v44 = vadd.f32 %v442_v14, %v430_v37  ;;  %v445_v49 = vadd.f32 %v443_v36, %v431_v30  ;;  %v502_v37 = vperm.slane %v380_v62, 1  ;;  %v503_v30 = vperm.slane %v383_v63, 1 }
  0xfd   :  { %v458_v61 = vadd.f32 %v456_v42, %v444_v44  ;;  %v459_v9 = vadd.f32 %v457_v0, %v445_v49  ;;  %v515_v44 = vmul.f32 %v513_v13, %v510_v41  ;;  %v522_v49 = vperm.slane %v380_v62, 3 }
  0xff   :  { %v462_v4 = vpop.permute.xlu1 %461 }
 0x100   :  { %v470_v56 = vmul.f32 %v468_v40, %v462_v4  ;;  %v471_v58 = vmul.f32 %v469_v26, %v462_v4  ;;  %v504_v40 = vmul.f32 %v502_v37, %v500_v31  ;;  %v505_v26 = vmul.f32 %v503_v30, %v500_v31 }
 0x101   :  { %v523_v4 = vperm.slane %v383_v63, 3 }
 0x102   :  { %v472_v12 = vadd.f32 %v470_v56, %v458_v61  ;;  %v473_v27 = vadd.f32 %v471_v58, %v459_v9 }
 0x104   :  { %v486_v32 = vadd.f32 %v484_v25, %v472_v12  ;;  %v487_v24 = vadd.f32 %v485_v39, %v473_v27 }
 0x108   :  { %v490_v2 = vpop.permute.xlu1 %489 }
 0x109   :  { %v494_v14 = vmul.f32 %v492_v28, %v490_v2  ;;  %v495_v36 = vmul.f32 %v493_v29, %v490_v2 }
 0x10b   :  { %v496_v38 = vadd.f32 %v494_v14, %v486_v32  ;;  %v497_v45 = vadd.f32 %v495_v36, %v487_v24  ;;  %v212_v62 = vpop.permute.xlu2 %211 }
 0x10d   :  { %v506_v42 = vadd.f32 %v504_v40, %v496_v38  ;;  %v507_v0 = vadd.f32 %v505_v26, %v497_v45 }
 0x10f   :  { %v516_v55 = vadd.f32 %v514_v43, %v506_v42  ;;  %v517_v46 = vadd.f32 %v515_v44, %v507_v0 }
 0x111   :  { %v520_v11 = vpop.permute.xlu1 %519 }
 0x112   :  { %v524_v56 = vmul.f32 %v522_v49, %v520_v11  ;;  %v525_v58 = vmul.f32 %v523_v4, %v520_v11 }
 0x113   :  { %v220_v40 = vpop.permute.xlu2 %219 }
 0x114   :  { %v1019_v61 = vadd.f32 %v524_v56, %v516_v55  ;;  %v1021_v9 = vadd.f32 %v525_v58, %v517_v46 }
 0x116   :  { %538 = vrot.lane.b32.xlu0 %v1021_v9, %s752_s27  ;;  %530 = vrot.lane.b32.xlu1 %v1021_v9, %s749_s24 }
 0x117   :  { %528 = vrot.lane.b32.xlu2 %v1019_v61, %s749_s24 }
 0x11e   :  { %563 = vperm.xlu0 %735, %v831_v22   ;;  %573 = vperm.xlu1 %736, %v831_v22  }
 0x11f   :  { %536 = vrot.lane.b32.xlu2 %v1019_v61, %s752_s27 }
 0x123   :  { %v210_v63 = vpop.permute.xlu1 %209 }
 0x124   :  { %v213_v25 = vsel %vm38_vm0, %v210_v63, %v212_v62  ;;  %v214_v39 = vsel %vm38_vm0, %v212_v62, %v210_v63 }
 0x125   :  { %v215_v12 = vsel %vm23_vm1, %v214_v39, 0.0  ;;  %v238_v27 = vperm.slane %v213_v25, 0  ;;  %v248_v28 = vperm.slane %v213_v25, 1  ;;  %v258_v32 = vperm.slane %v213_v25, 2 }
 0x126   :  { %v237_v29 = vperm.slane %v215_v12, 0  ;;  %v247_v2 = vperm.slane %v215_v12, 1  ;;  %740 = vset.pattern.permute.xlu0 %v754_v16  ;;  %738 = vset.pattern.permute.xlu1 %v750_v8  ;;  %v257_v14 = vperm.slane %v215_v12, 2  ;;  %v268_v30 = vperm.slane %v213_v25, 3 }
 0x127   :  { %v240_v31 = vmul.f32 %v238_v27, %v953_v47  ;;  %583 = vperm.xlu2 %737, %v831_v22   ;;  %613 = vperm.xlu0 %740, %v831_v22   ;;  %v250_v37 = vmul.f32 %v248_v28, %v937_v48  ;;  %v267_v38 = vperm.slane %v215_v12, 3  ;;  %v260_v51 = vmul.f32 %v258_v32, %v967_v54 }
 0x128   :  { %v239_v24 = vmul.f32 %v237_v29, %v953_v47  ;;  %593 = vperm.xlu1 %738, %v831_v22   ;;  %v249_v8 = vmul.f32 %v247_v2, %v937_v48  ;;  %v259_v47 = vmul.f32 %v257_v14, %v967_v54  ;;  %v270_v42 = vmul.f32 %v268_v30, %v946_v7 }
 0x129   :  { %v242_v36 = vadd.f32 %v240_v31, %v989_v10 }
 0x12a   :  { %v241_v16 = vadd.f32 %v239_v24, %v989_v10  ;;  %v269_v10 = vmul.f32 %v267_v38, %v946_v7 }
 0x12b   :  { %v252_v45 = vadd.f32 %v250_v37, %v242_v36  ;;  %v218_v13 = vpop.permute.xlu1 %217 }
 0x12c   :  { %v251_v26 = vadd.f32 %v249_v8, %v241_v16  ;;  %v222_v0 = vsel %vm56_vm2, %v220_v40, %v218_v13  ;;  %v221_v4 = vsel %vm56_vm2, %v218_v13, %v220_v40 }
 0x12d   :  { %v262_v41 = vadd.f32 %v260_v51, %v252_v45  ;;  %v224_v49 = vsel %vm26_vm3, %v222_v0, 0.0  ;;  %v317_v55 = vperm.slane %v221_v4, 0  ;;  %v327_v56 = vperm.slane %v221_v4, 1 }
 0x12e   :  { %v261_v43 = vadd.f32 %v259_v47, %v251_v26  ;;  %v338_v63 = vperm.slane %v224_v49, 2  ;;  %v348_v12 = vperm.slane %v224_v49, 3  ;;  %v347_v27 = vperm.slane %v221_v4, 3 }
 0x12f   :  { %v272_v44 = vadd.f32 %v270_v42, %v262_v41  ;;  %739 = vset.pattern.permute.xlu2 %v753_v15  ;;  %745 = vset.pattern.permute.xlu0 %v757_v19  ;;  %v318_v19 = vperm.slane %v224_v49, 0  ;;  %v319_v25 = vmul.f32 %v317_v55, %v971_v57 }
 0x130   :  { %v271_v48 = vadd.f32 %v269_v10, %v261_v43  ;;  %741 = vset.pattern.permute.xlu1 %v756_v18  ;;  %603 = vperm.xlu2 %739, %v831_v22   ;;  %v350_v2 = vmul.f32 %v348_v12, %v979_v1  ;;  %v349_v31 = vmul.f32 %v347_v27, %v979_v1 }
 0x131   :  { %v282_v54 = vadd.f32 %v963_v53, %v272_v44  ;;  %663 = vperm.xlu0 %745, %v831_v22   ;;  %623 = vperm.xlu1 %741, %v831_v22   ;;  %v328_v53 = vperm.slane %v224_v49, 1  ;;  %v320_v62 = vmul.f32 %v318_v19, %v971_v57 }
 0x132   :  { %v281_v7 = vadd.f32 %v961_v52, %v271_v48 }
 0x133   :  { %v292_v15 = vadd.f32 %v975_v60, %v282_v54  ;;  %v337_v60 = vperm.slane %v221_v4, 2  ;;  %v548_v24 = vpop.permute.xlu1 %547 }
 0x134   :  { %v291_v11 = vadd.f32 %v973_v59, %v281_v7  ;;  %v330_v59 = vmul.f32 %v328_v53, %v985_v5  ;;  %v597_v53 = vperm.slane %v1021_v9, 0 }
 0x135   :  { %v302_v18 = vadd.f32 %v959_v35, %v292_v15  ;;  %v339_v28 = vmul.f32 %v337_v60, %v987_v6  ;;  %v606_v60 = vperm.slane %v1019_v61, 1 }
 0x136   :  { %v301_v46 = vadd.f32 %v957_v50, %v291_v11  ;;  %v329_v50 = vmul.f32 %v327_v56, %v985_v5 }
 0x137   :  { %v312_v58 = vadd.f32 %v983_v23, %v302_v18  ;;  %v596_v18 = vperm.slane %v1019_v61, 0 }
 0x138   :  { %v311_v52 = vadd.f32 %v981_v3, %v301_v46  ;;  %742 = vset.pattern.permute.xlu2 %v755_v17  ;;  %v340_v3 = vmul.f32 %v338_v63, %v987_v6 }
 0x139   :  { %v322_v39 = vadd.f32 %v320_v62, %v312_v58  ;;  %743 = vset.pattern.permute.xlu1 %v759_v21  ;;  %633 = vperm.xlu2 %742, %v831_v22   ;;  %v554_v21 = vpop.permute.xlu2 %553 }
 0x13a   :  { %v321_v35 = vadd.f32 %v319_v25, %v311_v52  ;;  %643 = vperm.xlu1 %743, %v831_v22   ;;  %v607_v25 = vperm.slane %v1021_v9, 1 }
 0x13b   :  { %v332_v23 = vadd.f32 %v330_v59, %v322_v39 }
 0x13c   :  { %v331_v57 = vadd.f32 %v329_v50, %v321_v35 }
 0x13d   :  { %v342_v29 = vadd.f32 %v340_v3, %v332_v23  ;;  %v616_v23 = vperm.slane %v1019_v61, 2  ;;  %v617_v3 = vperm.slane %v1021_v9, 2 }
 0x13e   :  { %v341_v17 = vadd.f32 %v339_v28, %v331_v57  ;;  %v626_v57 = vperm.slane %v1019_v61, 3 }
 0x13f   :  { %v352_v5 = vadd.f32 %v350_v2, %v342_v29 }
 0x140   :  { %v351_v32 = vadd.f32 %v349_v31, %v341_v17  ;;  %v627_v31 = vperm.slane %v1021_v9, 3 }
 0x141   :  { %354 = vst [vmem:[%s1125_s5 + $0x8] sm:$0xff] %v352_v5  ;;  %744 = vset.pattern.permute.xlu2 %v758_v20 }
 0x142   :  { %353 = vst [vmem:[%s1125_s5] sm:$0xff] %v351_v32  ;;  %653 = vperm.xlu2 %744, %v831_v22  }
 0x171   :  { %v529_v6 = vpop.permute.xlu2 %528 }
 0x179   :  { %v537_v14 = vpop.permute.xlu2 %536 }
 0x181   :  { %v584_v20 = vpop.permute.xlu2 %583 }
 0x188   :  { %v539_v36 = vpop.permute.xlu0 %538  ;;  %v531_v1 = vpop.permute.xlu1 %530 }
 0x189   :  { %v532_v37 = vsel %vm38_vm0, %v529_v6, %v531_v1  ;;  %v533_v30 = vsel %vm38_vm0, %v531_v1, %v529_v6  ;;  %v541_v28 = vsel %vm56_vm2, %v539_v36, %v537_v14 }
 0x18a   :  { %v534_v16 = vsel %vm23_vm1, %v533_v30, 0.0  ;;  %v557_v38 = vperm.slane %v532_v37, 0  ;;  %v567_v40 = vperm.slane %v532_v37, 1  ;;  %v577_v48 = vperm.slane %v532_v37, 2  ;;  %v604_v15 = vpop.permute.xlu2 %603 }
 0x18b   :  { %v556_v8 = vperm.slane %v534_v16, 0  ;;  %v566_v13 = vperm.slane %v534_v16, 1  ;;  %v576_v44 = vperm.slane %v534_v16, 2  ;;  %v586_v49 = vperm.slane %v534_v16, 3 }
 0x18c   :  { %v559_v51 = vmul.f32 %v557_v38, %v554_v21  ;;  %v587_v54 = vperm.slane %v532_v37, 3  ;;  %v608_v12 = vmul.f32 %v606_v60, %v604_v15  ;;  %v609_v35 = vmul.f32 %v607_v25, %v604_v15 }
 0x18d   :  { %v558_v22 = vmul.f32 %v556_v8, %v554_v21  ;;  %v588_v46 = vmul.f32 %v586_v49, %v584_v20  ;;  %v543_v1 = vsel %vm26_vm3, %v541_v28, 0.0 }
 0x18e   :  { %v561_v0 = vadd.f32 %v559_v51, %v548_v24  ;;  %v589_v56 = vmul.f32 %v587_v54, %v584_v20  ;;  %v637_v16 = vperm.slane %v543_v1, 0  ;;  %v647_v9 = vperm.slane %v543_v1, 1 }
 0x18f   :  { %v560_v42 = vadd.f32 %v558_v22, %v548_v24  ;;  %v540_v24 = vsel %vm56_vm2, %v537_v14, %v539_v36 }
 0x190   :  { %v564_v45 = vpop.permute.xlu0 %563  ;;  %v574_v26 = vpop.permute.xlu1 %573  ;;  %v636_v30 = vperm.slane %v540_v24, 0  ;;  %v646_v22 = vperm.slane %v540_v24, 1  ;;  %v656_v51 = vperm.slane %v540_v24, 2 }
 0x191   :  { %v568_v47 = vmul.f32 %v566_v13, %v564_v45  ;;  %v569_v41 = vmul.f32 %v567_v40, %v564_v45  ;;  %v578_v4 = vmul.f32 %v576_v44, %v574_v26  ;;  %v579_v7 = vmul.f32 %v577_v48, %v574_v26 }
 0x192   :  { %v657_v13 = vperm.slane %v543_v1, 2 }
 0x193   :  { %v570_v43 = vadd.f32 %v568_v47, %v560_v42  ;;  %v571_v10 = vadd.f32 %v569_v41, %v561_v0  ;;  %v634_v50 = vpop.permute.xlu2 %633  ;;  %v666_v41 = vperm.slane %v540_v24, 3  ;;  %v667_v42 = vperm.slane %v543_v1, 3 }
 0x194   :  { %v638_v20 = vmul.f32 %v636_v30, %v634_v50  ;;  %v639_v45 = vmul.f32 %v637_v16, %v634_v50 }
 0x195   :  { %v580_v19 = vadd.f32 %v578_v4, %v570_v43  ;;  %v581_v11 = vadd.f32 %v579_v7, %v571_v10 }
 0x197   :  { %v590_v63 = vadd.f32 %v588_v46, %v580_v19  ;;  %v591_v52 = vadd.f32 %v589_v56, %v581_v11 }
 0x199   :  { %v614_v27 = vpop.permute.xlu0 %613 }
 0x19a   :  { %v594_v55 = vpop.permute.xlu1 %593  ;;  %v618_v5 = vmul.f32 %v616_v23, %v614_v27  ;;  %v619_v32 = vmul.f32 %v617_v3, %v614_v27 }
 0x19b   :  { %v598_v58 = vmul.f32 %v596_v18, %v594_v55  ;;  %v599_v62 = vmul.f32 %v597_v53, %v594_v55 }
 0x19c   :  { %v654_v40 = vpop.permute.xlu2 %653 }
 0x19d   :  { %v600_v39 = vadd.f32 %v598_v58, %v590_v63  ;;  %v601_v59 = vadd.f32 %v599_v62, %v591_v52  ;;  %v658_v0 = vmul.f32 %v656_v51, %v654_v40  ;;  %v659_v43 = vmul.f32 %v657_v13, %v654_v40 }
 0x19f   :  { %v610_v29 = vadd.f32 %v608_v12, %v600_v39  ;;  %v611_v2 = vadd.f32 %v609_v35, %v601_v59 }
 0x1a1   :  { %v620_v37 = vadd.f32 %v618_v5, %v610_v29  ;;  %v621_v61 = vadd.f32 %v619_v32, %v611_v2 }
 0x1a3   :  { %v624_v17 = vpop.permute.xlu1 %623  ;;  %v664_v33 = vpop.permute.xlu0 %663 }
 0x1a4   :  { %v628_v21 = vmul.f32 %v626_v57, %v624_v17  ;;  %v629_v6 = vmul.f32 %v627_v31, %v624_v17  ;;  %v668_v48 = vmul.f32 %v666_v41, %v664_v33  ;;  %v669_v49 = vmul.f32 %v667_v42, %v664_v33 }
 0x1a6   :  { %v630_v8 = vadd.f32 %v628_v21, %v620_v37  ;;  %v631_v38 = vadd.f32 %v629_v6, %v621_v61 }
 0x1a8   :  { %v640_v47 = vadd.f32 %v638_v20, %v630_v8  ;;  %v641_v34 = vadd.f32 %v639_v45, %v631_v38 }
 0x1ac   :  { %v644_v26 = vpop.permute.xlu1 %643 }
 0x1ad   :  { %v648_v14 = vmul.f32 %v646_v22, %v644_v26  ;;  %v649_v36 = vmul.f32 %v647_v9, %v644_v26 }
 0x1af   :  { %v650_v10 = vadd.f32 %v648_v14, %v640_v47  ;;  %v651_v44 = vadd.f32 %v649_v36, %v641_v34 }
 0x1b1   :  { %v660_v54 = vadd.f32 %v658_v0, %v650_v10  ;;  %v661_v4 = vadd.f32 %v659_v43, %v651_v44 }
 0x1b3   :  { %v670_v7 = vadd.f32 %v668_v48, %v660_v54  ;;  %v671_v15 = vadd.f32 %v669_v49, %v661_v4 }
 0x1b5   :  { %680 = vst [vmem:[%s1125_s5 + $0x10] sm:$0xff] %v670_v7 }
 0x1b6   :  { %681 = vst [vmem:[%s1125_s5 + $0x18] sm:$0xff] %v671_v15 }

</bundles_post_ra>
